<compile_context>
chip_gen: v7x
topology: tpu7x:2x2x1
jax: 0.10.0
libtpu: 0.0.40
codegen_flags: <defaults>
</compile_context>

<pallas_src>
import math
import jax
import jax.numpy as jnp
from jax.experimental import pallas as pl
from jax.experimental.pallas import tpu as pltpu

# ---- model config (small, consistent with the module's __init__) ----
VOCAB = 100      # len(TEXT.vocab)
VOCAB_PAD = 128  # vocab padded to full MXU/lane depth for the fused embedding
LABEL = 4        # len(LABEL.vocab)
EMBED = 32       # args['embed_size']
NHEAD = 4        # args['num_heads']
HIDDEN = 64      # args['hidden_size'] (dim_feedforward)
LAYERS = 2       # args['num_layers']
SEQ = 8          # L (axis 0 of `batch`)
BATCH = 2        # N (axis 1 of `batch`)
NL = BATCH * SEQ
HD = EMBED // NHEAD
LN_EPS = 1e-5
OUT_PAD = 128    # lane-dense padded classifier width


def _layernorm(x, g, b, eps=LN_EPS):
    mu = jnp.mean(x, axis=-1, keepdims=True)
    xc = x - mu
    var = jnp.mean(xc * xc, axis=-1, keepdims=True)
    return xc * jax.lax.rsqrt(var + eps) * g + b


def transformer_kernel(tok_ref, embed_ref, bias_ref,
                       wqk_ref, bqk_ref, wvo_ref, battn_ref,
                       w1_ref, b1_ref, w2_ref, b2_ref,
                       g1_ref, be1_ref, g2_ref, be2_ref,
                       fcw_ref, fcb_ref,
                       y_ref):
    f32 = jnp.float32

    # ---- fused embedding lookup: one-hot(tokens) @ padded table (K=128 MXU) ----
    tok = tok_ref[...]                                               # (NL, 1) int32, n-major
    vocab_iota = jax.lax.broadcasted_iota(jnp.int32, (NL, VOCAB_PAD), 1)
    onehot = (vocab_iota == tok).astype(f32)                         # (NL, 128) full-lane
    x = jnp.dot(onehot, embed_ref[...], preferred_element_type=f32)  # (NL, E)

    attn_bias = bias_ref[...]      # (NL, NL): 0 within a sequence, -1e9 across sequences

    for l in range(LAYERS):                                          # static unroll over layers
        wqk, bqk = wqk_ref[l], bqk_ref[l]                            # (E, 2E), (1, 2E)
        wvo, battn = wvo_ref[l], battn_ref[l]                        # (E, NH*E), (1, E)
        w1, b1 = w1_ref[l], b1_ref[l]                                # (E, H), (1, H)
        w2, b2 = w2_ref[l], b2_ref[l]                                # (H, E), (1, E)
        g1, be1 = g1_ref[l], be1_ref[l]
        g2, be2 = g2_ref[l], be2_ref[l]

        # ---- multi-head self-attention ----
        # fused Q|K projection; the 1/sqrt(hd) scale is pre-folded into the Q block
        qk = jnp.dot(x, wqk, preferred_element_type=f32) + bqk       # (NL, 2E)
        # fused per-head (Wv_h @ Wo_h) projection, heads side by side on 128 lanes
        vo = jnp.dot(x, wvo, preferred_element_type=f32)             # (NL, NH*E)

        acc = None
        for h in range(NHEAD):                                       # static unroll over heads
            q_h = qk[:, h * HD:(h + 1) * HD]                         # (NL, HD)
            k_h = qk[:, EMBED + h * HD: EMBED + (h + 1) * HD]        # (NL, HD)
            s = jnp.einsum('qd,kd->qk', q_h, k_h,
                           preferred_element_type=f32) + attn_bias   # (NL, NL)
            s = s - jnp.max(s, axis=-1, keepdims=True)
            e = jnp.exp(s)
            p = e * pl.reciprocal(jnp.sum(e, axis=-1, keepdims=True), approx=True)
            # context already in model space (V and out-proj folded at init)
            part = jnp.dot(p, vo[:, h * EMBED:(h + 1) * EMBED],
                           preferred_element_type=f32)               # (NL, E)
            acc = part if acc is None else acc + part
        attn = acc + battn                                           # battn = bv@wo + bo

        x = _layernorm(x + attn, g1, be1)                            # post-norm (PyTorch default)

        # ---- feed-forward ----
        ff = jnp.dot(x, w1, preferred_element_type=f32) + b1
        ff = jnp.maximum(ff, 0.0)                                    # relu (default activation)
        ff = jnp.dot(ff, w2, preferred_element_type=f32) + b2
        x = _layernorm(x + ff, g2, be2)

    # ---- max-pool over the batch axis (n-major row chunks) -> (SEQ, E) ----
    z = x[0:SEQ, :]
    for n in range(1, BATCH):
        z = jnp.maximum(z, x[n * SEQ:(n + 1) * SEQ, :])

    # TODO(synk): nn.Dropout is identity at inference; not implemented.
    # Lane-dense classifier head (weights zero-padded to 128 lanes -> unmasked store).
    y_ref[...] = jnp.dot(z, fcw_ref[...], preferred_element_type=f32) + fcb_ref[...]


def init_params(key):
    ks = jax.random.split(key, 16)

    def nrm(k, shape, s=0.05):
        return jax.random.normal(k, shape, jnp.float32) * s

    p = dict(
        embed=nrm(ks[0], (VOCAB, EMBED), 0.1),
        # natural layouts (used by the pure-JAX reference); linear weights stored
        # pre-transposed so forward is x @ W; biases/ln params as (1, dim) rows
        wq=nrm(ks[1], (LAYERS, EMBED, EMBED)),
        wk=nrm(ks[2], (LAYERS, EMBED, EMBED)),
        wv=nrm(ks[3], (LAYERS, EMBED, EMBED)),
        bq=nrm(ks[4], (LAYERS, 1, EMBED)),
        bk=nrm(ks[5], (LAYERS, 1, EMBED)),
        bv=nrm(ks[6], (LAYERS, 1, EMBED)),
        wo=nrm(ks[7], (LAYERS, EMBED, EMBED)),
        bo=nrm(ks[8], (LAYERS, 1, EMBED)),
        w1=nrm(ks[9], (LAYERS, EMBED, HIDDEN)),
        b1=nrm(ks[10], (LAYERS, 1, HIDDEN)),
        w2=nrm(ks[11], (LAYERS, HIDDEN, EMBED)),
        b2=nrm(ks[12], (LAYERS, 1, EMBED)),
        g1=jnp.ones((LAYERS, 1, EMBED), jnp.float32),
        be1=jnp.zeros((LAYERS, 1, EMBED), jnp.float32),
        g2=jnp.ones((LAYERS, 1, EMBED), jnp.float32),
        be2=jnp.zeros((LAYERS, 1, EMBED), jnp.float32),
        fcw=nrm(ks[13], (EMBED, LABEL)),
        fcb=nrm(ks[14], (1, LABEL)),
    )

    # ---- kernel-layout packing (done once, outside the hot path) ----
    scale = 1.0 / math.sqrt(HD)
    # vocab zero-padded to 128 rows -> full-lane one-hot / K=128 contraction in-kernel
    p['k_embed'] = jnp.zeros((VOCAB_PAD, EMBED), jnp.float32).at[:VOCAB].set(p['embed'])
    # fused Q|K projection; softmax scale folded into the Q block (exact: softmax is
    # invariant to the max-subtraction, scaling q is identical to scaling scores)
    p['k_wqk'] = jnp.concatenate([p['wq'] * scale, p['wk']], axis=-1)      # (L, E, 2E)
    p['k_bqk'] = jnp.concatenate([p['bq'] * scale, p['bk']], axis=-1)      # (L, 1, 2E)
    # per-head V- and output-projections folded: W_vo_h = Wv[:, h] @ Wo[h, :],
    # heads laid side by side -> ONE lane-dense (E, NH*E) = (32, 128) matmul in-kernel
    wvo_blocks = [
        jnp.einsum('lec,lcf->lef',
                   p['wv'][:, :, h * HD:(h + 1) * HD],
                   p['wo'][:, h * HD:(h + 1) * HD, :])
        for h in range(NHEAD)
    ]
    p['k_wvo'] = jnp.concatenate(wvo_blocks, axis=-1)                      # (L, E, NH*E)
    # combined attention output bias (softmax rows sum to 1): bv @ wo + bo
    p['k_battn'] = jnp.einsum('lre,lef->lrf', p['bv'], p['wo']) + p['bo']  # (L, 1, E)
    # lane-dense (128-wide) classifier head
    p['k_fcw'] = jnp.zeros((EMBED, OUT_PAD), jnp.float32).at[:, :LABEL].set(p['fcw'])
    p['k_fcb'] = jnp.zeros((1, OUT_PAD), jnp.float32).at[:, :LABEL].set(p['fcb'])
    # block-diagonal additive attention bias (rows are n-major: row = n*SEQ + l)
    seq_id = jnp.arange(NL, dtype=jnp.int32) // SEQ
    p['attn_bias'] = jnp.where(seq_id[:, None] == seq_id[None, :],
                               0.0, -1e9).astype(jnp.float32)
    return p


def transformer_forward(tokens, p):
    """tokens: (SEQ, BATCH) int32 token ids (seq-first, as torchtext)."""
    # n-major token column (row = n*SEQ + l), matching the kernel's activation slab
    tok_nl = jnp.transpose(tokens).reshape(NL, 1).astype(jnp.int32)

    args = [tok_nl, p['k_embed'], p['attn_bias'],
            p['k_wqk'], p['k_bqk'], p['k_wvo'], p['k_battn'],
            p['w1'], p['b1'], p['w2'], p['b2'],
            p['g1'], p['be1'], p['g2'], p['be2'],
            p['k_fcw'], p['k_fcb']]

    # TODO(synk): if many (SEQ, BATCH) examples are scored, add a leading grid axis
    # over examples (constant index_maps keep the weights VMEM-resident) marked
    # "parallel" to amortize launch overhead and engage both v7x TensorCores; a
    # single forward (the module's semantics) needs no grid.
    y_pad = pl.pallas_call(
        transformer_kernel,
        out_shape=jax.ShapeDtypeStruct((SEQ, OUT_PAD), jnp.float32),
        in_specs=[pl.BlockSpec(memory_space=pltpu.MemorySpace.VMEM)] * len(args),
        out_specs=pl.BlockSpec(memory_space=pltpu.MemorySpace.VMEM),
    )(*args)
    return y_pad[:, :LABEL]


def transformer_reference(tokens, p):
    """Pure-JAX reference with the original (unfused) math — independent check."""
    emb = jnp.take(p['embed'], tokens, axis=0)                       # (L, N, E)
    x = jnp.transpose(emb, (1, 0, 2)).reshape(NL, EMBED)             # n-major slab
    scale = 1.0 / math.sqrt(HD)
    for l in range(LAYERS):
        q = x @ p['wq'][l] + p['bq'][l]
        k = x @ p['wk'][l] + p['bk'][l]
        v = x @ p['wv'][l] + p['bv'][l]
        rows = []
        for n in range(BATCH):
            r = slice(n * SEQ, (n + 1) * SEQ)
            out_n = jnp.zeros((SEQ, EMBED), jnp.float32)
            for h in range(NHEAD):
                c = slice(h * HD, (h + 1) * HD)
                s = (q[r, c] @ k[r, c].T) * scale
                pr = jax.nn.softmax(s, axis=-1)
                out_n = out_n + (pr @ v[r, c]) @ p['wo'][l][c, :]
            rows.append(out_n)
        attn = jnp.concatenate(rows, axis=0) + p['bo'][l]
        x = _layernorm(x + attn, p['g1'][l], p['be1'][l])
        ff = jax.nn.relu(x @ p['w1'][l] + p['b1'][l]) @ p['w2'][l] + p['b2'][l]
        x = _layernorm(x + ff, p['g2'][l], p['be2'][l])
    z = jnp.max(x.reshape(BATCH, SEQ, EMBED), axis=0)
    return z @ p['fcw'] + p['fcb']


if __name__ == "__main__":
    key = jax.random.PRNGKey(0)
    pkey, tkey = jax.random.split(key)
    params = init_params(pkey)
    tokens = jax.random.randint(tkey, (SEQ, BATCH), 0, VOCAB, dtype=jnp.int32)

    y = jax.jit(transformer_forward)(tokens, params)
    y = jax.block_until_ready(y)

    y_ref = transformer_reference(tokens, params)
    assert y.shape == (SEQ, LABEL)
    # tolerance accounts for the EUP approx-reciprocal in the kernel softmax
    assert jnp.allclose(y, y_ref, atol=2e-3, rtol=2e-3), "mismatch vs JAX reference"

    print("KERNEL_OK")
</pallas_src>

<mosaic_0001>
module attributes {stable_mosaic.version = 11 : i64} {
  func.func @transformer_kernel(%arg0: memref<16x1xi32, #tpu.memory_space<vmem>>, %arg1: memref<128x32xf32, #tpu.memory_space<vmem>>, %arg2: memref<16x16xf32, #tpu.memory_space<vmem>>, %arg3: memref<2x32x64xf32, #tpu.memory_space<vmem>>, %arg4: memref<2x1x64xf32, #tpu.memory_space<vmem>>, %arg5: memref<2x32x128xf32, #tpu.memory_space<vmem>>, %arg6: memref<2x1x32xf32, #tpu.memory_space<vmem>>, %arg7: memref<2x32x64xf32, #tpu.memory_space<vmem>>, %arg8: memref<2x1x64xf32, #tpu.memory_space<vmem>>, %arg9: memref<2x64x32xf32, #tpu.memory_space<vmem>>, %arg10: memref<2x1x32xf32, #tpu.memory_space<vmem>>, %arg11: memref<2x1x32xf32, #tpu.memory_space<vmem>>, %arg12: memref<2x1x32xf32, #tpu.memory_space<vmem>>, %arg13: memref<2x1x32xf32, #tpu.memory_space<vmem>>, %arg14: memref<2x1x32xf32, #tpu.memory_space<vmem>>, %arg15: memref<32x128xf32, #tpu.memory_space<vmem>>, %arg16: memref<1x128xf32, #tpu.memory_space<vmem>>, %arg17: memref<8x128xf32, #tpu.memory_space<vmem>>) attributes {dimension_semantics = [], scalar_prefetch = 0 : i64, scratch_operands = 0 : i64, tpu.core_type = #tpu.core_type<tc>} {
    %c0 = arith.constant 0 : index
    %c0_0 = arith.constant 0 : index
    %0 = vector.load %arg0[%c0, %c0_0] : memref<16x1xi32, #tpu.memory_space<vmem>>, vector<16x1xi32>
    %1 = tpu.iota {dimensions = array<i32: 1>} : vector<16x128xi32>
    %2 = vector.broadcast %0 : vector<16x1xi32> to vector<16x128xi32>
    %3 = arith.cmpi eq, %1, %2 : vector<16x128xi32>
    %4 = arith.extui %3 : vector<16x128xi1> to vector<16x128xi32>
    %5 = arith.sitofp %4 : vector<16x128xi32> to vector<16x128xf32>
    %c0_1 = arith.constant 0 : index
    %c0_2 = arith.constant 0 : index
    %6 = vector.load %arg1[%c0_1, %c0_2] : memref<128x32xf32, #tpu.memory_space<vmem>>, vector<128x32xf32>
    %cst = arith.constant dense<0.000000e+00> : vector<16x32xf32>
    %7 = tpu.matmul %5, %6, %cst {dimension_numbers = #tpu.dot_dimension_numbers<[1], [0], [0], [1], [0, 0, 1, 1], [], []>} : vector<16x128xf32>, vector<128x32xf32>, vector<16x32xf32> -> vector<16x32xf32>
    %c0_3 = arith.constant 0 : index
    %c0_4 = arith.constant 0 : index
    %8 = vector.load %arg2[%c0_3, %c0_4] : memref<16x16xf32, #tpu.memory_space<vmem>>, vector<16x16xf32>
    %c0_5 = arith.constant 0 : index
    %c0_6 = arith.constant 0 : index
    %c0_7 = arith.constant 0 : index
    %9 = vector.load %arg3[%c0_5, %c0_6, %c0_7] : memref<2x32x64xf32, #tpu.memory_space<vmem>>, vector<1x32x64xf32>
    %10 = vector.shape_cast %9 : vector<1x32x64xf32> to vector<32x64xf32>
    %c0_8 = arith.constant 0 : index
    %c0_9 = arith.constant 0 : index
    %c0_10 = arith.constant 0 : index
    %11 = vector.load %arg4[%c0_8, %c0_9, %c0_10] : memref<2x1x64xf32, #tpu.memory_space<vmem>>, vector<1x1x64xf32>
    %12 = vector.shape_cast %11 : vector<1x1x64xf32> to vector<1x64xf32>
    %c0_11 = arith.constant 0 : index
    %c0_12 = arith.constant 0 : index
    %c0_13 = arith.constant 0 : index
    %13 = vector.load %arg5[%c0_11, %c0_12, %c0_13] : memref<2x32x128xf32, #tpu.memory_space<vmem>>, vector<1x32x128xf32>
    %14 = vector.shape_cast %13 : vector<1x32x128xf32> to vector<32x128xf32>
    %c0_14 = arith.constant 0 : index
    %c0_15 = arith.constant 0 : index
    %c0_16 = arith.constant 0 : index
    %15 = vector.load %arg6[%c0_14, %c0_15, %c0_16] : memref<2x1x32xf32, #tpu.memory_space<vmem>>, vector<1x1x32xf32>
    %16 = vector.shape_cast %15 : vector<1x1x32xf32> to vector<1x32xf32>
    %c0_17 = arith.constant 0 : index
    %c0_18 = arith.constant 0 : index
    %c0_19 = arith.constant 0 : index
    %17 = vector.load %arg7[%c0_17, %c0_18, %c0_19] : memref<2x32x64xf32, #tpu.memory_space<vmem>>, vector<1x32x64xf32>
    %18 = vector.shape_cast %17 : vector<1x32x64xf32> to vector<32x64xf32>
    %c0_20 = arith.constant 0 : index
    %c0_21 = arith.constant 0 : index
    %c0_22 = arith.constant 0 : index
    %19 = vector.load %arg8[%c0_20, %c0_21, %c0_22] : memref<2x1x64xf32, #tpu.memory_space<vmem>>, vector<1x1x64xf32>
    %20 = vector.shape_cast %19 : vector<1x1x64xf32> to vector<1x64xf32>
    %c0_23 = arith.constant 0 : index
    %c0_24 = arith.constant 0 : index
    %c0_25 = arith.constant 0 : index
    %21 = vector.load %arg9[%c0_23, %c0_24, %c0_25] : memref<2x64x32xf32, #tpu.memory_space<vmem>>, vector<1x64x32xf32>
    %22 = vector.shape_cast %21 : vector<1x64x32xf32> to vector<64x32xf32>
    %c0_26 = arith.constant 0 : index
    %c0_27 = arith.constant 0 : index
    %c0_28 = arith.constant 0 : index
    %23 = vector.load %arg10[%c0_26, %c0_27, %c0_28] : memref<2x1x32xf32, #tpu.memory_space<vmem>>, vector<1x1x32xf32>
    %24 = vector.shape_cast %23 : vector<1x1x32xf32> to vector<1x32xf32>
    %c0_29 = arith.constant 0 : index
    %c0_30 = arith.constant 0 : index
    %c0_31 = arith.constant 0 : index
    %25 = vector.load %arg11[%c0_29, %c0_30, %c0_31] : memref<2x1x32xf32, #tpu.memory_space<vmem>>, vector<1x1x32xf32>
    %26 = vector.shape_cast %25 : vector<1x1x32xf32> to vector<1x32xf32>
    %c0_32 = arith.constant 0 : index
    %c0_33 = arith.constant 0 : index
    %c0_34 = arith.constant 0 : index
    %27 = vector.load %arg12[%c0_32, %c0_33, %c0_34] : memref<2x1x32xf32, #tpu.memory_space<vmem>>, vector<1x1x32xf32>
    %28 = vector.shape_cast %27 : vector<1x1x32xf32> to vector<1x32xf32>
    %c0_35 = arith.constant 0 : index
    %c0_36 = arith.constant 0 : index
    %c0_37 = arith.constant 0 : index
    %29 = vector.load %arg13[%c0_35, %c0_36, %c0_37] : memref<2x1x32xf32, #tpu.memory_space<vmem>>, vector<1x1x32xf32>
    %30 = vector.shape_cast %29 : vector<1x1x32xf32> to vector<1x32xf32>
    %c0_38 = arith.constant 0 : index
    %c0_39 = arith.constant 0 : index
    %c0_40 = arith.constant 0 : index
    %31 = vector.load %arg14[%c0_38, %c0_39, %c0_40] : memref<2x1x32xf32, #tpu.memory_space<vmem>>, vector<1x1x32xf32>
    %32 = vector.shape_cast %31 : vector<1x1x32xf32> to vector<1x32xf32>
    %cst_41 = arith.constant dense<0.000000e+00> : vector<16x64xf32>
    %33 = tpu.matmul %7, %10, %cst_41 {dimension_numbers = #tpu.dot_dimension_numbers<[1], [0], [0], [1], [0, 0, 1, 1], [], []>} : vector<16x32xf32>, vector<32x64xf32>, vector<16x64xf32> -> vector<16x64xf32>
    %34 = vector.broadcast %12 : vector<1x64xf32> to vector<16x64xf32>
    %35 = arith.addf %33, %34 : vector<16x64xf32>
    %cst_42 = arith.constant dense<0.000000e+00> : vector<16x128xf32>
    %36 = tpu.matmul %7, %14, %cst_42 {dimension_numbers = #tpu.dot_dimension_numbers<[1], [0], [0], [1], [0, 0, 1, 1], [], []>} : vector<16x32xf32>, vector<32x128xf32>, vector<16x128xf32> -> vector<16x128xf32>
    %37 = vector.extract_strided_slice %35 {offsets = [0, 0], sizes = [16, 8], strides = [1, 1]} : vector<16x64xf32> to vector<16x8xf32>
    %38 = vector.extract_strided_slice %35 {offsets = [0, 32], sizes = [16, 8], strides = [1, 1]} : vector<16x64xf32> to vector<16x8xf32>
    "tpu.trace_start"() <{level = 10 : i32, message = "qd,kd->qk"}> : () -> ()
    %cst_43 = arith.constant dense<0.000000e+00> : vector<16x16xf32>
    %39 = tpu.matmul %37, %38, %cst_43 {dimension_numbers = #tpu.dot_dimension_numbers<[1], [1], [0], [0], [0, 0, 1, 0], [], []>} : vector<16x8xf32>, vector<16x8xf32>, vector<16x16xf32> -> vector<16x16xf32>
    "tpu.trace_stop"() : () -> ()
    %40 = arith.addf %39, %8 : vector<16x16xf32>
    %cst_44 = arith.constant dense<0xFF800000> : vector<16xf32>
    %41 = vector.multi_reduction <maximumf>, %40, %cst_44 [1] : vector<16x16xf32> to vector<16xf32>
    %42 = vector.shape_cast %41 : vector<16xf32> to vector<16x1xf32>
    %43 = vector.broadcast %42 : vector<16x1xf32> to vector<16x16xf32>
    %44 = arith.subf %40, %43 : vector<16x16xf32>
    %45 = math.exp %44 : vector<16x16xf32>
    %cst_45 = arith.constant dense<0.000000e+00> : vector<16xf32>
    %46 = vector.multi_reduction <add>, %45, %cst_45 [1] : vector<16x16xf32> to vector<16xf32>
    %47 = vector.shape_cast %46 : vector<16xf32> to vector<16x1xf32>
    %48 = tpu.reciprocal %47 {approx = true} : vector<16x1xf32> -> vector<16x1xf32>
    %49 = vector.broadcast %48 : vector<16x1xf32> to vector<16x16xf32>
    %50 = arith.mulf %45, %49 : vector<16x16xf32>
    %51 = vector.extract_strided_slice %36 {offsets = [0, 0], sizes = [16, 32], strides = [1, 1]} : vector<16x128xf32> to vector<16x32xf32>
    %cst_46 = arith.constant dense<0.000000e+00> : vector<16x32xf32>
    %52 = tpu.matmul %50, %51, %cst_46 {dimension_numbers = #tpu.dot_dimension_numbers<[1], [0], [0], [1], [0, 0, 1, 1], [], []>} : vector<16x16xf32>, vector<16x32xf32>, vector<16x32xf32> -> vector<16x32xf32>
    %53 = vector.extract_strided_slice %35 {offsets = [0, 8], sizes = [16, 8], strides = [1, 1]} : vector<16x64xf32> to vector<16x8xf32>
    %54 = vector.extract_strided_slice %35 {offsets = [0, 40], sizes = [16, 8], strides = [1, 1]} : vector<16x64xf32> to vector<16x8xf32>
    "tpu.trace_start"() <{level = 10 : i32, message = "qd,kd->qk"}> : () -> ()
    %cst_47 = arith.constant dense<0.000000e+00> : vector<16x16xf32>
    %55 = tpu.matmul %53, %54, %cst_47 {dimension_numbers = #tpu.dot_dimension_numbers<[1], [1], [0], [0], [0, 0, 1, 0], [], []>} : vector<16x8xf32>, vector<16x8xf32>, vector<16x16xf32> -> vector<16x16xf32>
    "tpu.trace_stop"() : () -> ()
    %56 = arith.addf %55, %8 : vector<16x16xf32>
    %cst_48 = arith.constant dense<0xFF800000> : vector<16xf32>
    %57 = vector.multi_reduction <maximumf>, %56, %cst_48 [1] : vector<16x16xf32> to vector<16xf32>
    %58 = vector.shape_cast %57 : vector<16xf32> to vector<16x1xf32>
    %59 = vector.broadcast %58 : vector<16x1xf32> to vector<16x16xf32>
    %60 = arith.subf %56, %59 : vector<16x16xf32>
    %61 = math.exp %60 : vector<16x16xf32>
    %cst_49 = arith.constant dense<0.000000e+00> : vector<16xf32>
    %62 = vector.multi_reduction <add>, %61, %cst_49 [1] : vector<16x16xf32> to vector<16xf32>
    %63 = vector.shape_cast %62 : vector<16xf32> to vector<16x1xf32>
    %64 = tpu.reciprocal %63 {approx = true} : vector<16x1xf32> -> vector<16x1xf32>
    %65 = vector.broadcast %64 : vector<16x1xf32> to vector<16x16xf32>
    %66 = arith.mulf %61, %65 : vector<16x16xf32>
    %67 = vector.extract_strided_slice %36 {offsets = [0, 32], sizes = [16, 32], strides = [1, 1]} : vector<16x128xf32> to vector<16x32xf32>
    %cst_50 = arith.constant dense<0.000000e+00> : vector<16x32xf32>
    %68 = tpu.matmul %66, %67, %cst_50 {dimension_numbers = #tpu.dot_dimension_numbers<[1], [0], [0], [1], [0, 0, 1, 1], [], []>} : vector<16x16xf32>, vector<16x32xf32>, vector<16x32xf32> -> vector<16x32xf32>
    %69 = arith.addf %52, %68 : vector<16x32xf32>
    %70 = vector.extract_strided_slice %35 {offsets = [0, 16], sizes = [16, 8], strides = [1, 1]} : vector<16x64xf32> to vector<16x8xf32>
    %71 = vector.extract_strided_slice %35 {offsets = [0, 48], sizes = [16, 8], strides = [1, 1]} : vector<16x64xf32> to vector<16x8xf32>
    "tpu.trace_start"() <{level = 10 : i32, message = "qd,kd->qk"}> : () -> ()
    %cst_51 = arith.constant dense<0.000000e+00> : vector<16x16xf32>
    %72 = tpu.matmul %70, %71, %cst_51 {dimension_numbers = #tpu.dot_dimension_numbers<[1], [1], [0], [0], [0, 0, 1, 0], [], []>} : vector<16x8xf32>, vector<16x8xf32>, vector<16x16xf32> -> vector<16x16xf32>
    "tpu.trace_stop"() : () -> ()
    %73 = arith.addf %72, %8 : vector<16x16xf32>
    %cst_52 = arith.constant dense<0xFF800000> : vector<16xf32>
    %74 = vector.multi_reduction <maximumf>, %73, %cst_52 [1] : vector<16x16xf32> to vector<16xf32>
    %75 = vector.shape_cast %74 : vector<16xf32> to vector<16x1xf32>
    %76 = vector.broadcast %75 : vector<16x1xf32> to vector<16x16xf32>
    %77 = arith.subf %73, %76 : vector<16x16xf32>
    %78 = math.exp %77 : vector<16x16xf32>
    %cst_53 = arith.constant dense<0.000000e+00> : vector<16xf32>
    %79 = vector.multi_reduction <add>, %78, %cst_53 [1] : vector<16x16xf32> to vector<16xf32>
    %80 = vector.shape_cast %79 : vector<16xf32> to vector<16x1xf32>
    %81 = tpu.reciprocal %80 {approx = true} : vector<16x1xf32> -> vector<16x1xf32>
    %82 = vector.broadcast %81 : vector<16x1xf32> to vector<16x16xf32>
    %83 = arith.mulf %78, %82 : vector<16x16xf32>
    %84 = vector.extract_strided_slice %36 {offsets = [0, 64], sizes = [16, 32], strides = [1, 1]} : vector<16x128xf32> to vector<16x32xf32>
    %cst_54 = arith.constant dense<0.000000e+00> : vector<16x32xf32>
    %85 = tpu.matmul %83, %84, %cst_54 {dimension_numbers = #tpu.dot_dimension_numbers<[1], [0], [0], [1], [0, 0, 1, 1], [], []>} : vector<16x16xf32>, vector<16x32xf32>, vector<16x32xf32> -> vector<16x32xf32>
    %86 = arith.addf %69, %85 : vector<16x32xf32>
    %87 = vector.extract_strided_slice %35 {offsets = [0, 24], sizes = [16, 8], strides = [1, 1]} : vector<16x64xf32> to vector<16x8xf32>
    %88 = vector.extract_strided_slice %35 {offsets = [0, 56], sizes = [16, 8], strides = [1, 1]} : vector<16x64xf32> to vector<16x8xf32>
    "tpu.trace_start"() <{level = 10 : i32, message = "qd,kd->qk"}> : () -> ()
    %cst_55 = arith.constant dense<0.000000e+00> : vector<16x16xf32>
    %89 = tpu.matmul %87, %88, %cst_55 {dimension_numbers = #tpu.dot_dimension_numbers<[1], [1], [0], [0], [0, 0, 1, 0], [], []>} : vector<16x8xf32>, vector<16x8xf32>, vector<16x16xf32> -> vector<16x16xf32>
    "tpu.trace_stop"() : () -> ()
    %90 = arith.addf %89, %8 : vector<16x16xf32>
    %cst_56 = arith.constant dense<0xFF800000> : vector<16xf32>
    %91 = vector.multi_reduction <maximumf>, %90, %cst_56 [1] : vector<16x16xf32> to vector<16xf32>
    %92 = vector.shape_cast %91 : vector<16xf32> to vector<16x1xf32>
    %93 = vector.broadcast %92 : vector<16x1xf32> to vector<16x16xf32>
    %94 = arith.subf %90, %93 : vector<16x16xf32>
    %95 = math.exp %94 : vector<16x16xf32>
    %cst_57 = arith.constant dense<0.000000e+00> : vector<16xf32>
    %96 = vector.multi_reduction <add>, %95, %cst_57 [1] : vector<16x16xf32> to vector<16xf32>
    %97 = vector.shape_cast %96 : vector<16xf32> to vector<16x1xf32>
    %98 = tpu.reciprocal %97 {approx = true} : vector<16x1xf32> -> vector<16x1xf32>
    %99 = vector.broadcast %98 : vector<16x1xf32> to vector<16x16xf32>
    %100 = arith.mulf %95, %99 : vector<16x16xf32>
    %101 = vector.extract_strided_slice %36 {offsets = [0, 96], sizes = [16, 32], strides = [1, 1]} : vector<16x128xf32> to vector<16x32xf32>
    %cst_58 = arith.constant dense<0.000000e+00> : vector<16x32xf32>
    %102 = tpu.matmul %100, %101, %cst_58 {dimension_numbers = #tpu.dot_dimension_numbers<[1], [0], [0], [1], [0, 0, 1, 1], [], []>} : vector<16x16xf32>, vector<16x32xf32>, vector<16x32xf32> -> vector<16x32xf32>
    %103 = arith.addf %86, %102 : vector<16x32xf32>
    %104 = vector.broadcast %16 : vector<1x32xf32> to vector<16x32xf32>
    %105 = arith.addf %103, %104 : vector<16x32xf32>
    %106 = arith.addf %7, %105 : vector<16x32xf32>
    %cst_59 = arith.constant dense<0.000000e+00> : vector<16xf32>
    %107 = vector.multi_reduction <add>, %106, %cst_59 [1] : vector<16x32xf32> to vector<16xf32>
    %108 = vector.shape_cast %107 : vector<16xf32> to vector<16x1xf32>
    %cst_60 = arith.constant 3.200000e+01 : f32
    %109 = vector.broadcast %cst_60 : f32 to vector<16x1xf32>
    %110 = arith.divf %108, %109 : vector<16x1xf32>
    %111 = vector.broadcast %110 : vector<16x1xf32> to vector<16x32xf32>
    %112 = arith.subf %106, %111 : vector<16x32xf32>
    %113 = arith.mulf %112, %112 : vector<16x32xf32>
    %cst_61 = arith.constant dense<0.000000e+00> : vector<16xf32>
    %114 = vector.multi_reduction <add>, %113, %cst_61 [1] : vector<16x32xf32> to vector<16xf32>
    %115 = vector.shape_cast %114 : vector<16xf32> to vector<16x1xf32>
    %cst_62 = arith.constant 3.200000e+01 : f32
    %116 = vector.broadcast %cst_62 : f32 to vector<16x1xf32>
    %117 = arith.divf %115, %116 : vector<16x1xf32>
    %cst_63 = arith.constant 9.99999974E-6 : f32
    %118 = vector.broadcast %cst_63 : f32 to vector<16x1xf32>
    %119 = arith.addf %117, %118 : vector<16x1xf32>
    %120 = math.rsqrt %119 : vector<16x1xf32>
    %121 = vector.broadcast %120 : vector<16x1xf32> to vector<16x32xf32>
    %122 = arith.mulf %112, %121 : vector<16x32xf32>
    %123 = vector.broadcast %26 : vector<1x32xf32> to vector<16x32xf32>
    %124 = arith.mulf %122, %123 : vector<16x32xf32>
    %125 = vector.broadcast %28 : vector<1x32xf32> to vector<16x32xf32>
    %126 = arith.addf %124, %125 : vector<16x32xf32>
    %cst_64 = arith.constant dense<0.000000e+00> : vector<16x64xf32>
    %127 = tpu.matmul %126, %18, %cst_64 {dimension_numbers = #tpu.dot_dimension_numbers<[1], [0], [0], [1], [0, 0, 1, 1], [], []>} : vector<16x32xf32>, vector<32x64xf32>, vector<16x64xf32> -> vector<16x64xf32>
    %128 = vector.broadcast %20 : vector<1x64xf32> to vector<16x64xf32>
    %129 = arith.addf %127, %128 : vector<16x64xf32>
    %cst_65 = arith.constant 0.000000e+00 : f32
    %130 = vector.broadcast %cst_65 : f32 to vector<16x64xf32>
    %131 = arith.maximumf %129, %130 : vector<16x64xf32>
    %cst_66 = arith.constant dense<0.000000e+00> : vector<16x32xf32>
    %132 = tpu.matmul %131, %22, %cst_66 {dimension_numbers = #tpu.dot_dimension_numbers<[1], [0], [0], [1], [0, 0, 1, 1], [], []>} : vector<16x64xf32>, vector<64x32xf32>, vector<16x32xf32> -> vector<16x32xf32>
    %133 = vector.broadcast %24 : vector<1x32xf32> to vector<16x32xf32>
    %134 = arith.addf %132, %133 : vector<16x32xf32>
    %135 = arith.addf %126, %134 : vector<16x32xf32>
    %cst_67 = arith.constant dense<0.000000e+00> : vector<16xf32>
    %136 = vector.multi_reduction <add>, %135, %cst_67 [1] : vector<16x32xf32> to vector<16xf32>
    %137 = vector.shape_cast %136 : vector<16xf32> to vector<16x1xf32>
    %cst_68 = arith.constant 3.200000e+01 : f32
    %138 = vector.broadcast %cst_68 : f32 to vector<16x1xf32>
    %139 = arith.divf %137, %138 : vector<16x1xf32>
    %140 = vector.broadcast %139 : vector<16x1xf32> to vector<16x32xf32>
    %141 = arith.subf %135, %140 : vector<16x32xf32>
    %142 = arith.mulf %141, %141 : vector<16x32xf32>
    %cst_69 = arith.constant dense<0.000000e+00> : vector<16xf32>
    %143 = vector.multi_reduction <add>, %142, %cst_69 [1] : vector<16x32xf32> to vector<16xf32>
    %144 = vector.shape_cast %143 : vector<16xf32> to vector<16x1xf32>
    %cst_70 = arith.constant 3.200000e+01 : f32
    %145 = vector.broadcast %cst_70 : f32 to vector<16x1xf32>
    %146 = arith.divf %144, %145 : vector<16x1xf32>
    %cst_71 = arith.constant 9.99999974E-6 : f32
    %147 = vector.broadcast %cst_71 : f32 to vector<16x1xf32>
    %148 = arith.addf %146, %147 : vector<16x1xf32>
    %149 = math.rsqrt %148 : vector<16x1xf32>
    %150 = vector.broadcast %149 : vector<16x1xf32> to vector<16x32xf32>
    %151 = arith.mulf %141, %150 : vector<16x32xf32>
    %152 = vector.broadcast %30 : vector<1x32xf32> to vector<16x32xf32>
    %153 = arith.mulf %151, %152 : vector<16x32xf32>
    %154 = vector.broadcast %32 : vector<1x32xf32> to vector<16x32xf32>
    %155 = arith.addf %153, %154 : vector<16x32xf32>
    %c1 = arith.constant 1 : index
    %c0_72 = arith.constant 0 : index
    %c0_73 = arith.constant 0 : index
    %156 = vector.load %arg3[%c1, %c0_72, %c0_73] : memref<2x32x64xf32, #tpu.memory_space<vmem>>, vector<1x32x64xf32>
    %157 = vector.shape_cast %156 : vector<1x32x64xf32> to vector<32x64xf32>
    %c1_74 = arith.constant 1 : index
    %c0_75 = arith.constant 0 : index
    %c0_76 = arith.constant 0 : index
    %158 = vector.load %arg4[%c1_74, %c0_75, %c0_76] : memref<2x1x64xf32, #tpu.memory_space<vmem>>, vector<1x1x64xf32>
    %159 = vector.shape_cast %158 : vector<1x1x64xf32> to vector<1x64xf32>
    %c1_77 = arith.constant 1 : index
    %c0_78 = arith.constant 0 : index
    %c0_79 = arith.constant 0 : index
    %160 = vector.load %arg5[%c1_77, %c0_78, %c0_79] : memref<2x32x128xf32, #tpu.memory_space<vmem>>, vector<1x32x128xf32>
    %161 = vector.shape_cast %160 : vector<1x32x128xf32> to vector<32x128xf32>
    %c1_80 = arith.constant 1 : index
    %c0_81 = arith.constant 0 : index
    %c0_82 = arith.constant 0 : index
    %162 = vector.load %arg6[%c1_80, %c0_81, %c0_82] : memref<2x1x32xf32, #tpu.memory_space<vmem>>, vector<1x1x32xf32>
    %163 = vector.shape_cast %162 : vector<1x1x32xf32> to vector<1x32xf32>
    %c1_83 = arith.constant 1 : index
    %c0_84 = arith.constant 0 : index
    %c0_85 = arith.constant 0 : index
    %164 = vector.load %arg7[%c1_83, %c0_84, %c0_85] : memref<2x32x64xf32, #tpu.memory_space<vmem>>, vector<1x32x64xf32>
    %165 = vector.shape_cast %164 : vector<1x32x64xf32> to vector<32x64xf32>
    %c1_86 = arith.constant 1 : index
    %c0_87 = arith.constant 0 : index
    %c0_88 = arith.constant 0 : index
    %166 = vector.load %arg8[%c1_86, %c0_87, %c0_88] : memref<2x1x64xf32, #tpu.memory_space<vmem>>, vector<1x1x64xf32>
    %167 = vector.shape_cast %166 : vector<1x1x64xf32> to vector<1x64xf32>
    %c1_89 = arith.constant 1 : index
    %c0_90 = arith.constant 0 : index
    %c0_91 = arith.constant 0 : index
    %168 = vector.load %arg9[%c1_89, %c0_90, %c0_91] : memref<2x64x32xf32, #tpu.memory_space<vmem>>, vector<1x64x32xf32>
    %169 = vector.shape_cast %168 : vector<1x64x32xf32> to vector<64x32xf32>
    %c1_92 = arith.constant 1 : index
    %c0_93 = arith.constant 0 : index
    %c0_94 = arith.constant 0 : index
    %170 = vector.load %arg10[%c1_92, %c0_93, %c0_94] : memref<2x1x32xf32, #tpu.memory_space<vmem>>, vector<1x1x32xf32>
    %171 = vector.shape_cast %170 : vector<1x1x32xf32> to vector<1x32xf32>
    %c1_95 = arith.constant 1 : index
    %c0_96 = arith.constant 0 : index
    %c0_97 = arith.constant 0 : index
    %172 = vector.load %arg11[%c1_95, %c0_96, %c0_97] : memref<2x1x32xf32, #tpu.memory_space<vmem>>, vector<1x1x32xf32>
    %173 = vector.shape_cast %172 : vector<1x1x32xf32> to vector<1x32xf32>
    %c1_98 = arith.constant 1 : index
    %c0_99 = arith.constant 0 : index
    %c0_100 = arith.constant 0 : index
    %174 = vector.load %arg12[%c1_98, %c0_99, %c0_100] : memref<2x1x32xf32, #tpu.memory_space<vmem>>, vector<1x1x32xf32>
    %175 = vector.shape_cast %174 : vector<1x1x32xf32> to vector<1x32xf32>
    %c1_101 = arith.constant 1 : index
    %c0_102 = arith.constant 0 : index
    %c0_103 = arith.constant 0 : index
    %176 = vector.load %arg13[%c1_101, %c0_102, %c0_103] : memref<2x1x32xf32, #tpu.memory_space<vmem>>, vector<1x1x32xf32>
    %177 = vector.shape_cast %176 : vector<1x1x32xf32> to vector<1x32xf32>
    %c1_104 = arith.constant 1 : index
    %c0_105 = arith.constant 0 : index
    %c0_106 = arith.constant 0 : index
    %178 = vector.load %arg14[%c1_104, %c0_105, %c0_106] : memref<2x1x32xf32, #tpu.memory_space<vmem>>, vector<1x1x32xf32>
    %179 = vector.shape_cast %178 : vector<1x1x32xf32> to vector<1x32xf32>
    %cst_107 = arith.constant dense<0.000000e+00> : vector<16x64xf32>
    %180 = tpu.matmul %155, %157, %cst_107 {dimension_numbers = #tpu.dot_dimension_numbers<[1], [0], [0], [1], [0, 0, 1, 1], [], []>} : vector<16x32xf32>, vector<32x64xf32>, vector<16x64xf32> -> vector<16x64xf32>
    %181 = vector.broadcast %159 : vector<1x64xf32> to vector<16x64xf32>
    %182 = arith.addf %180, %181 : vector<16x64xf32>
    %cst_108 = arith.constant dense<0.000000e+00> : vector<16x128xf32>
    %183 = tpu.matmul %155, %161, %cst_108 {dimension_numbers = #tpu.dot_dimension_numbers<[1], [0], [0], [1], [0, 0, 1, 1], [], []>} : vector<16x32xf32>, vector<32x128xf32>, vector<16x128xf32> -> vector<16x128xf32>
    %184 = vector.extract_strided_slice %182 {offsets = [0, 0], sizes = [16, 8], strides = [1, 1]} : vector<16x64xf32> to vector<16x8xf32>
    %185 = vector.extract_strided_slice %182 {offsets = [0, 32], sizes = [16, 8], strides = [1, 1]} : vector<16x64xf32> to vector<16x8xf32>
    "tpu.trace_start"() <{level = 10 : i32, message = "qd,kd->qk"}> : () -> ()
    %cst_109 = arith.constant dense<0.000000e+00> : vector<16x16xf32>
    %186 = tpu.matmul %184, %185, %cst_109 {dimension_numbers = #tpu.dot_dimension_numbers<[1], [1], [0], [0], [0, 0, 1, 0], [], []>} : vector<16x8xf32>, vector<16x8xf32>, vector<16x16xf32> -> vector<16x16xf32>
    "tpu.trace_stop"() : () -> ()
    %187 = arith.addf %186, %8 : vector<16x16xf32>
    %cst_110 = arith.constant dense<0xFF800000> : vector<16xf32>
    %188 = vector.multi_reduction <maximumf>, %187, %cst_110 [1] : vector<16x16xf32> to vector<16xf32>
    %189 = vector.shape_cast %188 : vector<16xf32> to vector<16x1xf32>
    %190 = vector.broadcast %189 : vector<16x1xf32> to vector<16x16xf32>
    %191 = arith.subf %187, %190 : vector<16x16xf32>
    %192 = math.exp %191 : vector<16x16xf32>
    %cst_111 = arith.constant dense<0.000000e+00> : vector<16xf32>
    %193 = vector.multi_reduction <add>, %192, %cst_111 [1] : vector<16x16xf32> to vector<16xf32>
    %194 = vector.shape_cast %193 : vector<16xf32> to vector<16x1xf32>
    %195 = tpu.reciprocal %194 {approx = true} : vector<16x1xf32> -> vector<16x1xf32>
    %196 = vector.broadcast %195 : vector<16x1xf32> to vector<16x16xf32>
    %197 = arith.mulf %192, %196 : vector<16x16xf32>
    %198 = vector.extract_strided_slice %183 {offsets = [0, 0], sizes = [16, 32], strides = [1, 1]} : vector<16x128xf32> to vector<16x32xf32>
    %cst_112 = arith.constant dense<0.000000e+00> : vector<16x32xf32>
    %199 = tpu.matmul %197, %198, %cst_112 {dimension_numbers = #tpu.dot_dimension_numbers<[1], [0], [0], [1], [0, 0, 1, 1], [], []>} : vector<16x16xf32>, vector<16x32xf32>, vector<16x32xf32> -> vector<16x32xf32>
    %200 = vector.extract_strided_slice %182 {offsets = [0, 8], sizes = [16, 8], strides = [1, 1]} : vector<16x64xf32> to vector<16x8xf32>
    %201 = vector.extract_strided_slice %182 {offsets = [0, 40], sizes = [16, 8], strides = [1, 1]} : vector<16x64xf32> to vector<16x8xf32>
    "tpu.trace_start"() <{level = 10 : i32, message = "qd,kd->qk"}> : () -> ()
    %cst_113 = arith.constant dense<0.000000e+00> : vector<16x16xf32>
    %202 = tpu.matmul %200, %201, %cst_113 {dimension_numbers = #tpu.dot_dimension_numbers<[1], [1], [0], [0], [0, 0, 1, 0], [], []>} : vector<16x8xf32>, vector<16x8xf32>, vector<16x16xf32> -> vector<16x16xf32>
    "tpu.trace_stop"() : () -> ()
    %203 = arith.addf %202, %8 : vector<16x16xf32>
    %cst_114 = arith.constant dense<0xFF800000> : vector<16xf32>
    %204 = vector.multi_reduction <maximumf>, %203, %cst_114 [1] : vector<16x16xf32> to vector<16xf32>
    %205 = vector.shape_cast %204 : vector<16xf32> to vector<16x1xf32>
    %206 = vector.broadcast %205 : vector<16x1xf32> to vector<16x16xf32>
    %207 = arith.subf %203, %206 : vector<16x16xf32>
    %208 = math.exp %207 : vector<16x16xf32>
    %cst_115 = arith.constant dense<0.000000e+00> : vector<16xf32>
    %209 = vector.multi_reduction <add>, %208, %cst_115 [1] : vector<16x16xf32> to vector<16xf32>
    %210 = vector.shape_cast %209 : vector<16xf32> to vector<16x1xf32>
    %211 = tpu.reciprocal %210 {approx = true} : vector<16x1xf32> -> vector<16x1xf32>
    %212 = vector.broadcast %211 : vector<16x1xf32> to vector<16x16xf32>
    %213 = arith.mulf %208, %212 : vector<16x16xf32>
    %214 = vector.extract_strided_slice %183 {offsets = [0, 32], sizes = [16, 32], strides = [1, 1]} : vector<16x128xf32> to vector<16x32xf32>
    %cst_116 = arith.constant dense<0.000000e+00> : vector<16x32xf32>
    %215 = tpu.matmul %213, %214, %cst_116 {dimension_numbers = #tpu.dot_dimension_numbers<[1], [0], [0], [1], [0, 0, 1, 1], [], []>} : vector<16x16xf32>, vector<16x32xf32>, vector<16x32xf32> -> vector<16x32xf32>
    %216 = arith.addf %199, %215 : vector<16x32xf32>
    %217 = vector.extract_strided_slice %182 {offsets = [0, 16], sizes = [16, 8], strides = [1, 1]} : vector<16x64xf32> to vector<16x8xf32>
    %218 = vector.extract_strided_slice %182 {offsets = [0, 48], sizes = [16, 8], strides = [1, 1]} : vector<16x64xf32> to vector<16x8xf32>
    "tpu.trace_start"() <{level = 10 : i32, message = "qd,kd->qk"}> : () -> ()
    %cst_117 = arith.constant dense<0.000000e+00> : vector<16x16xf32>
    %219 = tpu.matmul %217, %218, %cst_117 {dimension_numbers = #tpu.dot_dimension_numbers<[1], [1], [0], [0], [0, 0, 1, 0], [], []>} : vector<16x8xf32>, vector<16x8xf32>, vector<16x16xf32> -> vector<16x16xf32>
    "tpu.trace_stop"() : () -> ()
    %220 = arith.addf %219, %8 : vector<16x16xf32>
    %cst_118 = arith.constant dense<0xFF800000> : vector<16xf32>
    %221 = vector.multi_reduction <maximumf>, %220, %cst_118 [1] : vector<16x16xf32> to vector<16xf32>
    %222 = vector.shape_cast %221 : vector<16xf32> to vector<16x1xf32>
    %223 = vector.broadcast %222 : vector<16x1xf32> to vector<16x16xf32>
    %224 = arith.subf %220, %223 : vector<16x16xf32>
    %225 = math.exp %224 : vector<16x16xf32>
    %cst_119 = arith.constant dense<0.000000e+00> : vector<16xf32>
    %226 = vector.multi_reduction <add>, %225, %cst_119 [1] : vector<16x16xf32> to vector<16xf32>
    %227 = vector.shape_cast %226 : vector<16xf32> to vector<16x1xf32>
    %228 = tpu.reciprocal %227 {approx = true} : vector<16x1xf32> -> vector<16x1xf32>
    %229 = vector.broadcast %228 : vector<16x1xf32> to vector<16x16xf32>
    %230 = arith.mulf %225, %229 : vector<16x16xf32>
    %231 = vector.extract_strided_slice %183 {offsets = [0, 64], sizes = [16, 32], strides = [1, 1]} : vector<16x128xf32> to vector<16x32xf32>
    %cst_120 = arith.constant dense<0.000000e+00> : vector<16x32xf32>
    %232 = tpu.matmul %230, %231, %cst_120 {dimension_numbers = #tpu.dot_dimension_numbers<[1], [0], [0], [1], [0, 0, 1, 1], [], []>} : vector<16x16xf32>, vector<16x32xf32>, vector<16x32xf32> -> vector<16x32xf32>
    %233 = arith.addf %216, %232 : vector<16x32xf32>
    %234 = vector.extract_strided_slice %182 {offsets = [0, 24], sizes = [16, 8], strides = [1, 1]} : vector<16x64xf32> to vector<16x8xf32>
    %235 = vector.extract_strided_slice %182 {offsets = [0, 56], sizes = [16, 8], strides = [1, 1]} : vector<16x64xf32> to vector<16x8xf32>
    "tpu.trace_start"() <{level = 10 : i32, message = "qd,kd->qk"}> : () -> ()
    %cst_121 = arith.constant dense<0.000000e+00> : vector<16x16xf32>
    %236 = tpu.matmul %234, %235, %cst_121 {dimension_numbers = #tpu.dot_dimension_numbers<[1], [1], [0], [0], [0, 0, 1, 0], [], []>} : vector<16x8xf32>, vector<16x8xf32>, vector<16x16xf32> -> vector<16x16xf32>
    "tpu.trace_stop"() : () -> ()
    %237 = arith.addf %236, %8 : vector<16x16xf32>
    %cst_122 = arith.constant dense<0xFF800000> : vector<16xf32>
    %238 = vector.multi_reduction <maximumf>, %237, %cst_122 [1] : vector<16x16xf32> to vector<16xf32>
    %239 = vector.shape_cast %238 : vector<16xf32> to vector<16x1xf32>
    %240 = vector.broadcast %239 : vector<16x1xf32> to vector<16x16xf32>
    %241 = arith.subf %237, %240 : vector<16x16xf32>
    %242 = math.exp %241 : vector<16x16xf32>
    %cst_123 = arith.constant dense<0.000000e+00> : vector<16xf32>
    %243 = vector.multi_reduction <add>, %242, %cst_123 [1] : vector<16x16xf32> to vector<16xf32>
    %244 = vector.shape_cast %243 : vector<16xf32> to vector<16x1xf32>
    %245 = tpu.reciprocal %244 {approx = true} : vector<16x1xf32> -> vector<16x1xf32>
    %246 = vector.broadcast %245 : vector<16x1xf32> to vector<16x16xf32>
    %247 = arith.mulf %242, %246 : vector<16x16xf32>
    %248 = vector.extract_strided_slice %183 {offsets = [0, 96], sizes = [16, 32], strides = [1, 1]} : vector<16x128xf32> to vector<16x32xf32>
    %cst_124 = arith.constant dense<0.000000e+00> : vector<16x32xf32>
    %249 = tpu.matmul %247, %248, %cst_124 {dimension_numbers = #tpu.dot_dimension_numbers<[1], [0], [0], [1], [0, 0, 1, 1], [], []>} : vector<16x16xf32>, vector<16x32xf32>, vector<16x32xf32> -> vector<16x32xf32>
    %250 = arith.addf %233, %249 : vector<16x32xf32>
    %251 = vector.broadcast %163 : vector<1x32xf32> to vector<16x32xf32>
    %252 = arith.addf %250, %251 : vector<16x32xf32>
    %253 = arith.addf %155, %252 : vector<16x32xf32>
    %cst_125 = arith.constant dense<0.000000e+00> : vector<16xf32>
    %254 = vector.multi_reduction <add>, %253, %cst_125 [1] : vector<16x32xf32> to vector<16xf32>
    %255 = vector.shape_cast %254 : vector<16xf32> to vector<16x1xf32>
    %cst_126 = arith.constant 3.200000e+01 : f32
    %256 = vector.broadcast %cst_126 : f32 to vector<16x1xf32>
    %257 = arith.divf %255, %256 : vector<16x1xf32>
    %258 = vector.broadcast %257 : vector<16x1xf32> to vector<16x32xf32>
    %259 = arith.subf %253, %258 : vector<16x32xf32>
    %260 = arith.mulf %259, %259 : vector<16x32xf32>
    %cst_127 = arith.constant dense<0.000000e+00> : vector<16xf32>
    %261 = vector.multi_reduction <add>, %260, %cst_127 [1] : vector<16x32xf32> to vector<16xf32>
    %262 = vector.shape_cast %261 : vector<16xf32> to vector<16x1xf32>
    %cst_128 = arith.constant 3.200000e+01 : f32
    %263 = vector.broadcast %cst_128 : f32 to vector<16x1xf32>
    %264 = arith.divf %262, %263 : vector<16x1xf32>
    %cst_129 = arith.constant 9.99999974E-6 : f32
    %265 = vector.broadcast %cst_129 : f32 to vector<16x1xf32>
    %266 = arith.addf %264, %265 : vector<16x1xf32>
    %267 = math.rsqrt %266 : vector<16x1xf32>
    %268 = vector.broadcast %267 : vector<16x1xf32> to vector<16x32xf32>
    %269 = arith.mulf %259, %268 : vector<16x32xf32>
    %270 = vector.broadcast %173 : vector<1x32xf32> to vector<16x32xf32>
    %271 = arith.mulf %269, %270 : vector<16x32xf32>
    %272 = vector.broadcast %175 : vector<1x32xf32> to vector<16x32xf32>
    %273 = arith.addf %271, %272 : vector<16x32xf32>
    %cst_130 = arith.constant dense<0.000000e+00> : vector<16x64xf32>
    %274 = tpu.matmul %273, %165, %cst_130 {dimension_numbers = #tpu.dot_dimension_numbers<[1], [0], [0], [1], [0, 0, 1, 1], [], []>} : vector<16x32xf32>, vector<32x64xf32>, vector<16x64xf32> -> vector<16x64xf32>
    %275 = vector.broadcast %167 : vector<1x64xf32> to vector<16x64xf32>
    %276 = arith.addf %274, %275 : vector<16x64xf32>
    %cst_131 = arith.constant 0.000000e+00 : f32
    %277 = vector.broadcast %cst_131 : f32 to vector<16x64xf32>
    %278 = arith.maximumf %276, %277 : vector<16x64xf32>
    %cst_132 = arith.constant dense<0.000000e+00> : vector<16x32xf32>
    %279 = tpu.matmul %278, %169, %cst_132 {dimension_numbers = #tpu.dot_dimension_numbers<[1], [0], [0], [1], [0, 0, 1, 1], [], []>} : vector<16x64xf32>, vector<64x32xf32>, vector<16x32xf32> -> vector<16x32xf32>
    %280 = vector.broadcast %171 : vector<1x32xf32> to vector<16x32xf32>
    %281 = arith.addf %279, %280 : vector<16x32xf32>
    %282 = arith.addf %273, %281 : vector<16x32xf32>
    %cst_133 = arith.constant dense<0.000000e+00> : vector<16xf32>
    %283 = vector.multi_reduction <add>, %282, %cst_133 [1] : vector<16x32xf32> to vector<16xf32>
    %284 = vector.shape_cast %283 : vector<16xf32> to vector<16x1xf32>
    %cst_134 = arith.constant 3.200000e+01 : f32
    %285 = vector.broadcast %cst_134 : f32 to vector<16x1xf32>
    %286 = arith.divf %284, %285 : vector<16x1xf32>
    %287 = vector.broadcast %286 : vector<16x1xf32> to vector<16x32xf32>
    %288 = arith.subf %282, %287 : vector<16x32xf32>
    %289 = arith.mulf %288, %288 : vector<16x32xf32>
    %cst_135 = arith.constant dense<0.000000e+00> : vector<16xf32>
    %290 = vector.multi_reduction <add>, %289, %cst_135 [1] : vector<16x32xf32> to vector<16xf32>
    %291 = vector.shape_cast %290 : vector<16xf32> to vector<16x1xf32>
    %cst_136 = arith.constant 3.200000e+01 : f32
    %292 = vector.broadcast %cst_136 : f32 to vector<16x1xf32>
    %293 = arith.divf %291, %292 : vector<16x1xf32>
    %cst_137 = arith.constant 9.99999974E-6 : f32
    %294 = vector.broadcast %cst_137 : f32 to vector<16x1xf32>
    %295 = arith.addf %293, %294 : vector<16x1xf32>
    %296 = math.rsqrt %295 : vector<16x1xf32>
    %297 = vector.broadcast %296 : vector<16x1xf32> to vector<16x32xf32>
    %298 = arith.mulf %288, %297 : vector<16x32xf32>
    %299 = vector.broadcast %177 : vector<1x32xf32> to vector<16x32xf32>
    %300 = arith.mulf %298, %299 : vector<16x32xf32>
    %301 = vector.broadcast %179 : vector<1x32xf32> to vector<16x32xf32>
    %302 = arith.addf %300, %301 : vector<16x32xf32>
    %303 = vector.extract_strided_slice %302 {offsets = [0, 0], sizes = [8, 32], strides = [1, 1]} : vector<16x32xf32> to vector<8x32xf32>
    %304 = vector.extract_strided_slice %302 {offsets = [8, 0], sizes = [8, 32], strides = [1, 1]} : vector<16x32xf32> to vector<8x32xf32>
    %305 = arith.maximumf %303, %304 : vector<8x32xf32>
    %c0_138 = arith.constant 0 : index
    %c0_139 = arith.constant 0 : index
    %306 = vector.load %arg15[%c0_138, %c0_139] : memref<32x128xf32, #tpu.memory_space<vmem>>, vector<32x128xf32>
    %cst_140 = arith.constant dense<0.000000e+00> : vector<8x128xf32>
    %307 = tpu.matmul %305, %306, %cst_140 {dimension_numbers = #tpu.dot_dimension_numbers<[1], [0], [0], [1], [0, 0, 1, 1], [], []>} : vector<8x32xf32>, vector<32x128xf32>, vector<8x128xf32> -> vector<8x128xf32>
    %c0_141 = arith.constant 0 : index
    %c0_142 = arith.constant 0 : index
    %308 = vector.load %arg16[%c0_141, %c0_142] : memref<1x128xf32, #tpu.memory_space<vmem>>, vector<1x128xf32>
    %309 = vector.broadcast %308 : vector<1x128xf32> to vector<8x128xf32>
    %310 = arith.addf %307, %309 : vector<8x128xf32>
    %c0_143 = arith.constant 0 : index
    %c0_144 = arith.constant 0 : index
    %311 = vector.load %arg17[%c0_143, %c0_144] : memref<8x128xf32, #tpu.memory_space<vmem>>, vector<8x128xf32>
    tpu.vector_store %arg17[%c0_143, %c0_144], %310 {strides = array<i32>} : memref<8x128xf32, #tpu.memory_space<vmem>>, vector<8x128xf32>,
    return
  }
}

</mosaic_0001>

<bundles_post_ra>
// kernel: transformer_forward.1
= control target key start
LH: loop header
LB: loop body
LE: loop exit
PB: predicated region body
PF: predicated region fallthrough
CT: control target
= control target key end

     0   :  { %v3688_v0 = vmov 0   ;;  %v58_v33 = vlaneseq  ;;  %v3689_v36 = vmov 1.0   ;;  %vm199_vm2 = vcmask 261120   ;;  %s3690_s22 = smov 120   ;;  %s3691_s23 = smov 96   ;;  %s4300_s0 = inlined_call_operand.vmem [shape: s32[16,1], index: 0, kind: input, shape index: {}]   ;;  %s4301_s1 = inlined_call_operand.vmem [shape: f32[128,32], index: 1, kind: input, shape index: {}]   ;;  %s4302_s3 = inlined_call_operand.vmem [shape: f32[2,32,64], index: 3, kind: input, shape index: {}]   ;;  %s4303_s5 = inlined_call_operand.vmem [shape: f32[2,32,128], index: 5, kind: input, shape index: {}]   ;;  %s4304_s4 = inlined_call_operand.vmem [shape: f32[2,1,64], index: 4, kind: input, shape index: {}]   ;;  %s4305_s2 = inlined_call_operand.vmem [shape: f32[16,16], index: 2, kind: input, shape index: {}]   ;;  %s4306_s6 = inlined_call_operand.vmem [shape: f32[2,1,32], index: 6, kind: input, shape index: {}]   ;;  %s4307_s7 = inlined_call_operand.vmem [shape: f32[2,32,64], index: 7, kind: input, shape index: {}]   ;;  %s4308_s9 = inlined_call_operand.vmem [shape: f32[2,64,32], index: 9, kind: input, shape index: {}]   ;;  %s4309_s11 = inlined_call_operand.vmem [shape: f32[2,1,32], index: 11, kind: input, shape index: {}]   ;;  %s4310_s12 = inlined_call_operand.vmem [shape: f32[2,1,32], index: 12, kind: input, shape index: {}]   ;;  %s4311_s8 = inlined_call_operand.vmem [shape: f32[2,1,64], index: 8, kind: input, shape index: {}]   ;;  %s4312_s10 = inlined_call_operand.vmem [shape: f32[2,1,32], index: 10, kind: input, shape index: {}]   ;;  %s4313_s13 = inlined_call_operand.vmem [shape: f32[2,1,32], index: 13, kind: input, shape index: {}]   ;;  %s4314_s14 = inlined_call_operand.vmem [shape: f32[2,1,32], index: 14, kind: input, shape index: {}]   ;;  %s4315_s15 = inlined_call_operand.vmem [shape: f32[32,128], index: 15, kind: input, shape index: {}]   ;;  %s4316_s16 = inlined_call_operand.vmem [shape: f32[1,128], index: 16, kind: input, shape index: {}]   ;;  %s4317_s17 = inlined_call_operand.vmem [shape: f32[8,128], index: 17, kind: output, shape index: {}]  }
   0x1   :  { %4325 = sst [smem:[#allocation2_spill]] %s4300_s0  ;;  %3535 = vset.pattern.permute.xlu0 %v3688_v0  ;;  %v165_v14 = vld [vmem:[%s4302_s3] sm:$0xff]  ;;  %v166_v15 = vld [vmem:[%s4302_s3 + $0x8] sm:$0xff]  ;;  %v167_v16 = vld [vmem:[%s4302_s3 + $0x10] sm:$0xff]  ;;  %vm362_vm3 = vcmask 64512   ;;  %s3692_s24 = smov 88  }
   0x2   :  { %4326 = sst [smem:[#allocation3_spill]] %s4301_s1  ;;  %s4327_s26 = sld [smem:[#allocation2_spill]]  ;;  %v3343_v17 = vpack.c.bf16 %v166_v15, %v165_v14  ;;  %v168_v18 = vld [vmem:[%s4302_s3 + $0x18] sm:$0xff]  ;;  %v59_v34 = vand.u32 127, %v58_v33  ;;  %v170_v38 = vld [vmem:[%s4303_s5] sm:$0xff]  ;;  %v171_v39 = vld [vmem:[%s4303_s5 + $0x8] sm:$0xff] }
   0x3   :  { %s4328_s29 = sld [smem:[#allocation3_spill]]  ;;  %v3347_v19 = vpack.c.bf16 %v168_v18, %v167_v16  ;;  %v3351_v40 = vpack.c.bf16 %v171_v39, %v170_v38  ;;  %v172_v41 = vld [vmem:[%s4303_s5 + $0x10] sm:$0xff]  ;;  %v173_v42 = vld [vmem:[%s4303_s5 + $0x18] sm:$0xff]  ;;  %v2796_v46 = vld [vmem:[%s4304_s4] ss:$0 sm:$0xff]  ;;  %vm446_vm5 = vcmask 130048  }
   0x4   :  { %3344 = vmatprep.subr.bf16.mxu1 %v3343_v17  ;;  %v3355_v45 = vpack.c.bf16 %v173_v42, %v172_v41  ;;  %vm3902_vm4 = vmpackc.low %vm362_vm3, %vm362_vm3  ;;  %s4321_s30 = smov 104   ;;  %s3696_s18 = smov 80   ;;  %vm1304_vm6 = vcmask 523264   ;;  %vm3700_vm7 = vmmov 0  }
   0x5   :  { %3346 = vmatpush3.bf16.msra.mxu1 %v3343_v17  ;;  %s4320_s19 = smov 32   ;;  %s4323_s1 = smov 64  }
   0x6   :  { %3348 = vmatprep.subr.bf16.mxu1 %v3347_v19 }
   0x8   :  { %v56_v1 = vld [vmem:[%s4327_s26] sm:$0xff]  ;;  %v57_v6 = vld [vmem:[%s4327_s26 + $0x8] sm:$0xff]  ;;  %s3694_s26 = smov 112  }
   0x9   :  { %v72_v2 = vld [vmem:[%s4328_s29] sm:$0xff]  ;;  %61 = vperm.xlu0 %3535, %v56_v1   ;;  %v73_v3 = vld [vmem:[%s4328_s29 + $0x8] sm:$0xff]  ;;  %v74_v4 = vld [vmem:[%s4328_s29 + $0x10] sm:$0xff]  ;;  %3350 = vmatpush3.bf16.msra.mxu1 %v3347_v19 }
   0xa   :  { %v75_v5 = vld [vmem:[%s4328_s29 + $0x18] sm:$0xff]  ;;  %v3311_v7 = vpack.c.bf16 %v73_v3, %v72_v2  ;;  %v76_v9 = vld [vmem:[%s4328_s29 + $0x20] sm:$0xff]  ;;  %v77_v10 = vld [vmem:[%s4328_s29 + $0x28] sm:$0xff]  ;;  %3352 = vmatprep.subr.bf16.mxu1 %v3351_v40 }
   0xb   :  { %v3315_v8 = vpack.c.bf16 %v75_v5, %v74_v4  ;;  %v3319_v11 = vpack.c.bf16 %v77_v10, %v76_v9  ;;  %v78_v12 = vld [vmem:[%s4328_s29 + $0x30] sm:$0xff]  ;;  %v79_v13 = vld [vmem:[%s4328_s29 + $0x38] sm:$0xff]  ;;  %v80_v21 = vld [vmem:[%s4328_s29 + $0x40] sm:$0xff] }
   0xc   :  { %3312 = vmatprep.subr.bf16.mxu0 %v3311_v7  ;;  %v3323_v20 = vpack.c.bf16 %v79_v13, %v78_v12  ;;  %v81_v22 = vld [vmem:[%s4328_s29 + $0x48] sm:$0xff]  ;;  %v82_v24 = vld [vmem:[%s4328_s29 + $0x50] sm:$0xff]  ;;  %v83_v25 = vld [vmem:[%s4328_s29 + $0x58] sm:$0xff] }
   0xd   :  { %64 = vperm.xlu0 %3535, %v57_v6   ;;  %3314 = vmatpush3.bf16.msra.mxu0 %v3311_v7  ;;  %v3327_v23 = vpack.c.bf16 %v81_v22, %v80_v21  ;;  %v3331_v26 = vpack.c.bf16 %v83_v25, %v82_v24  ;;  %v84_v27 = vld [vmem:[%s4328_s29 + $0x60] sm:$0xff]  ;;  %v85_v28 = vld [vmem:[%s4328_s29 + $0x68] sm:$0xff]  ;;  %v86_v30 = vld [vmem:[%s4328_s29 + $0x70] sm:$0xff] }
   0xe   :  { %3316 = vmatprep.subr.bf16.mxu0 %v3315_v8  ;;  %v3335_v29 = vpack.c.bf16 %v85_v28, %v84_v27  ;;  %v87_v31 = vld [vmem:[%s4328_s29 + $0x78] sm:$0xff]  ;;  %v3921_v5 = vld [vmem:[%s4305_s2 + $0x8] sm:$0xff]  ;;  %v3926_v7 = vld [vmem:[%s4305_s2] sm:$0xff]  ;;  %s4324_s29 = smov 72  }
   0xf   :  { %v3339_v32 = vpack.c.bf16 %v87_v31, %v86_v30 }
  0x11   :  { %3318 = vmatpush3.bf16.msra.mxu0 %v3315_v8 }
  0x12   :  { %3320 = vmatprep.subr.bf16.mxu0 %v3319_v11 }
  0x15   :  { %3322 = vmatpush3.bf16.msra.mxu0 %v3319_v11 }
  0x16   :  { %3324 = vmatprep.subr.bf16.mxu0 %v3323_v20 }
  0x19   :  { %3326 = vmatpush3.bf16.msra.mxu0 %v3323_v20 }
  0x1a   :  { %3328 = vmatprep.subr.bf16.mxu0 %v3327_v23 }
  0x1d   :  { %3330 = vmatpush3.bf16.msra.mxu0 %v3327_v23 }
  0x1e   :  { %3332 = vmatprep.subr.bf16.mxu0 %v3331_v26 }
  0x21   :  { %3334 = vmatpush3.bf16.msra.mxu0 %v3331_v26 }
  0x22   :  { %3336 = vmatprep.subr.bf16.mxu0 %v3335_v29 }
  0x25   :  { %3338 = vmatpush3.bf16.msra.mxu0 %v3335_v29 }
  0x26   :  { %3340 = vmatprep.subr.bf16.mxu0 %v3339_v32 }
  0x29   :  { %3342 = vmatpush3.bf16.msra.mxu0 %v3339_v32 }
  0x88   :  { %v62_v35 = vpop.permute.xlu0 %61 }
  0x89   :  { %vm66_vm0 = vcmp.eq.s32.totalorder %v59_v34, %v62_v35 }
  0x8a   :  { %3081 = vmatprep.mubr.msk.f32.mxu0 %vm66_vm0, %v3689_v36 }
  0x8c   :  { %v65_v37 = vpop.permute.xlu0 %64 }
  0x8d   :  { %vm67_vm1 = vcmp.eq.s32.totalorder %v59_v34, %v65_v37 }
  0x8e   :  { %3082 = vmatmul.mubr.msk.f32.vlgmr.msra.gmra.mrb[0].mxu0 %vm67_vm1, %v3689_v36 }
 0x161   :  { %v3870_v43 = vpop.f32.mrb[0].mxu0 }
 0x162   :  { %v3872_v44 = vpop.f32.mrb[1].mxu0 }
 0x163   :  { %3092 = vmatprep.mubr.msk.f32.mxu1 %vm199_vm2, %v3872_v44 }
 0x164   :  { %3093 = vmatmul.mubr.msk.f32.vlgmr.msra.gmra.mrb[0].mxu1 %vm199_vm2, %v3870_v43 }
 0x165   :  { %3354 = vmatpush3.bf16.msra.mxu1 %v3351_v40  ;;  %3103 = vmatprep.mubr.msk.f32.mxu1 %vm199_vm2, %v3872_v44 }
 0x166   :  { %3356 = vmatprep.subr.bf16.mxu1 %v3355_v45 }
 0x169   :  { %3358 = vmatpush3.bf16.msra.mxu1 %v3355_v45 }
 0x16c   :  { %3104 = vmatmul.mubr.msk.f32.vlgmr.msra.gmra.mrb[2].mxu1 %vm199_vm2, %v3870_v43 }
 0x237   :  { %v3094_v47 = vpop.f32.mrb[0].mxu1 }
 0x238   :  { %v3885_v48 = vadd.f32 %v3094_v47, %v2796_v46  ;;  %v272_v49 = vpop.f32.mrb[1].mxu1 }
 0x239   :  { %v273_v50 = vadd.f32 %v2796_v46, %v272_v49 }
 0x23b   :  { %469 = vrot.lane.b32.xlu0 %v273_v50, %s3690_s22  ;;  %3110 = vmatprep.mubr.msk.f32.mxu1 %vm362_vm3, %v273_v50  ;;  %v3890_v51 = vpack.i.bf16 %v3885_v48, %v273_v50 }
 0x23d   :  { %3537 = vrot.lane.b32.xlu1 %v3890_v51, %s3691_s23 }
 0x23f   :  { %v3105_v52 = vpop.f32.mrb[2].mxu1 }
 0x240   :  { %v347_v53 = vpop.f32.mrb[3].mxu1 }
 0x241   :  { %3542 = vrot.lane.b32.xlu1 %v3890_v51, %s3692_s24  ;;  %v3375_v54 = vpack.c.bf16 %v3105_v52, %v347_v53  ;;  %v3896_v55 = vpack.i.bf16 %v3105_v52, %v347_v53 }
 0x243   :  { %3376 = vmatprep.subr.bf16.mxu0 %v3375_v54 }
 0x244   :  { %3378 = vmatpush3.bf16.msra.mxu0 %v3375_v54 }
 0x245   :  { %471 = vrot.lane.b32.xlu1 %v3885_v48, %s3690_s22 }
 0x2ad   :  { %v470_v1 = vpop.permute.xlu0 %469 }
 0x2af   :  { %v3538_v56 = vpop.permute.xlu1 %3537 }
 0x2b0   :  { %v3540_v57 = vunpack.i.h.bf16 %v3538_v56  ;;  %v3539_v58 = vunpack.i.l.bf16 %v3538_v56 }
 0x2b2   :  { %v3359_v60 = vpack.c.bf16 %v3540_v57, %v3539_v58 }
 0x2b3   :  { %v3543_v61 = vpop.permute.xlu1 %3542 }
 0x2b4   :  { %v3545_v62 = vunpack.i.h.bf16 %v3543_v61  ;;  %v3544_v63 = vunpack.i.l.bf16 %v3543_v61  ;;  %3361 = vmatprep.subr.msk.bf16.mxu1 %vm3902_vm4, %v3359_v60 }
 0x2b5   :  { %3364 = vmatpush3.bf16.xpose.msk.msra.mxu1 %vm3902_vm4, %v3359_v60 }
 0x2b6   :  { %v3365_v0 = vpack.c.bf16 %v3545_v62, %v3544_v63 }
 0x2b7   :  { %v472_v2 = vpop.permute.xlu1 %471 }
 0x2b8   :  { %3367 = vmatprep.subr.msk.bf16.mxu1 %vm3902_vm4, %v3365_v0 }
 0x2bc   :  { %3111 = vmatmul.mubr.msk.f32.vlgmr.msra.gmra.mrb[4].mxu1 %vm362_vm3, %v3885_v48 }
 0x2bd   :  { %3370 = vmatpush3.bf16.xpose.msk.msra.mxu1 %vm3902_vm4, %v3365_v0  ;;  %3117 = vmatprep.mubr.msk.f32.mxu1 %vm362_vm3, %v470_v1 }
 0x2c4   :  { %3118 = vmatmul.mubr.msk.f32.vlgmr.msra.gmra.mrb[6].mxu1 %vm362_vm3, %v472_v2 }
 0x38f   :  { %v3112_v3 = vpop.f32.mrb[4].mxu1 }
 0x390   :  { %v437_v4 = vpop.f32.mrb[5].mxu1  ;;  %v443_v29 = vadd.f32 %v3112_v3, %v3921_v5 }
 0x391   :  { %v3939_v13 = vadd.f32 %v437_v4, %v3926_v7 }
 0x392   :  { %v450_v30 = vsel %vm446_vm5, %v443_v29, -inf }
 0x393   :  { %v447_v14 = vsel %vm446_vm5, %v3939_v13, -inf }
 0x397   :  { %v3119_v6 = vpop.f32.mrb[6].mxu1 }
 0x398   :  { %v557_v8 = vadd.f32 %v3119_v6, %v3921_v5  ;;  %v551_v9 = vpop.f32.mrb[7].mxu1 }
 0x399   :  { %v552_v10 = vadd.f32 %v551_v9, %v3926_v7 }
 0x39a   :  { %v563_v11 = vsel %vm446_vm5, %v557_v8, -inf }
 0x39b   :  { %564 = vmax.xlane.f32.xlu1 %v563_v11  ;;  %v560_v12 = vsel %vm446_vm5, %v552_v10, -inf }
 0x39c   :  { %561 = vmax.xlane.f32.xlu0 %v560_v12 }
 0x3ac   :  { %3547 = vrot.lane.b32.xlu1 %v3896_v55, %s3691_s23 }
 0x3b0   :  { %3557 = vrot.lane.b32.xlu1 %v3890_v51, %s4324_s29 }
 0x3b4   :  { %752 = vrot.lane.b32.xlu1 %v273_v50, %s3694_s26 }
 0x3b8   :  { %954 = vrot.lane.b32.xlu1 %v273_v50, %s4321_s30 }
 0x3dc   :  { %448 = vmax.xlane.f32.xlu1 %v447_v14 }
 0x428   :  { %v565_v15 = vpop.xlane.xlu1 %564 }
 0x429   :  { %v567_v16 = vsub.f32 %v557_v8, %v565_v15  ;;  %v562_v17 = vpop.xlane.xlu0 %561 }
 0x42a   :  { %v566_v18 = vsub.f32 %v552_v10, %v562_v17 }
 0x42b   :  { %v570_v19 = vmul.f32 1.442695, %v567_v16 }
 0x42c   :  { %v568_v20 = vmul.f32 1.442695, %v566_v18  ;;  %v3548_v21 = vpop.permute.xlu1 %3547 }
 0x42d   :  { %3606 = vpow2.f32 %v570_v19  ;;  %v3550_v22 = vunpack.i.h.bf16 %v3548_v21  ;;  %v3549_v23 = vunpack.i.l.bf16 %v3548_v21 }
 0x42e   :  { %3608 = vpow2.f32 %v568_v20 }
 0x42f   :  { %v3371_v24 = vpack.c.bf16 %v3550_v22, %v3549_v23 }
 0x430   :  { %v3558_v37 = vpop.permute.xlu1 %3557 }
 0x431   :  { %3372 = vmatprep.subr.bf16.mxu1 %v3371_v24  ;;  %v3560_v40 = vunpack.i.h.bf16 %v3558_v37  ;;  %v3559_v41 = vunpack.i.l.bf16 %v3558_v37 }
 0x432   :  { %3374 = vmatpush3.bf16.msra.mxu1 %v3371_v24 }
 0x433   :  { %v3389_v46 = vpack.c.bf16 %v3560_v40, %v3559_v41 }
 0x434   :  { %v753_v47 = vpop.permute.xlu1 %752 }
 0x437   :  { %v3607_v25 = vpop.eup %3606 }
 0x438   :  { %v575_v26 = vsel %vm446_vm5, %v3607_v25, 0.0  ;;  %v3609_v27 = vpop.eup %3608  ;;  %v955_v49 = vpop.permute.xlu1 %954 }
 0x439   :  { %576 = vadd.xlane.f32.xlu0 %v575_v26  ;;  %v572_v28 = vsel %vm446_vm5, %v3609_v27, 0.0 }
 0x43d   :  { %573 = vadd.xlane.f32.xlu0 %v572_v28 }
 0x453   :  { %3552 = vrot.lane.b32.xlu0 %v3890_v51, %s3696_s18 }
 0x457   :  { %754 = vrot.lane.b32.xlu0 %v3885_v48, %s3694_s26 }
 0x45b   :  { %956 = vrot.lane.b32.xlu0 %v3885_v48, %s4321_s30 }
 0x469   :  { %v449_v52 = vpop.xlane.xlu1 %448 }
 0x46a   :  { %v453_v57 = vsub.f32 %v3939_v13, %v449_v52 }
 0x46c   :  { %v455_v60 = vmul.f32 1.442695, %v453_v57 }
 0x47a   :  { %451 = vmax.xlane.f32.xlu0 %v450_v30 }
 0x4c6   :  { %v577_v31 = vpop.xlane.xlu0 %576 }
 0x4c7   :  { %3610 = vrcp.f32 %v577_v31 }
 0x4ca   :  { %v574_v32 = vpop.xlane.xlu0 %573 }
 0x4cb   :  { %3612 = vrcp.f32 %v574_v32 }
 0x4ce   :  { %v3553_v33 = vpop.permute.xlu0 %3552 }
 0x4cf   :  { %v3555_v34 = vunpack.i.h.bf16 %v3553_v33  ;;  %v3554_v35 = vunpack.i.l.bf16 %v3553_v33 }
 0x4d1   :  { %v3379_v36 = vpack.c.bf16 %v3555_v34, %v3554_v35  ;;  %v3611_v38 = vpop.eup %3610 }
 0x4d2   :  { %v581_v45 = vmul.f32 %v3611_v38, %v3607_v25  ;;  %v755_v48 = vpop.permute.xlu0 %754 }
 0x4d3   :  { %3381 = vmatprep.subr.msk.bf16.mxu1 %vm3902_vm4, %v3379_v36 }
 0x4d5   :  { %v3613_v39 = vpop.eup %3612 }
 0x4d6   :  { %v580_v42 = vmul.f32 %v3613_v39, %v3609_v27  ;;  %v957_v50 = vpop.permute.xlu0 %956 }
 0x4d8   :  { %3124 = vmatprep.mubr.msk.f32.mxu1 %vm446_vm5, %v580_v42 }
 0x4d9   :  { %3125 = vmatmul.mubr.msk.f32.vlgmr.msra.gmra.mrb[8].mxu1 %vm446_vm5, %v581_v45 }
 0x4da   :  { %3384 = vmatpush3.bf16.xpose.msk.msra.mxu1 %vm3902_vm4, %v3379_v36  ;;  %3138 = vmatprep.mubr.msk.f32.mxu1 %vm362_vm3, %v753_v47 }
 0x4db   :  { %3391 = vmatprep.subr.msk.bf16.mxu1 %vm3902_vm4, %v3389_v46 }
 0x4e1   :  { %3139 = vmatmul.mubr.msk.f32.vlgmr.msra.gmra.mrb[10].mxu1 %vm362_vm3, %v755_v48 }
 0x4e2   :  { %3394 = vmatpush3.bf16.xpose.msk.msra.mxu1 %vm3902_vm4, %v3389_v46  ;;  %3152 = vmatprep.mubr.msk.f32.mxu1 %vm362_vm3, %v955_v49 }
 0x4e9   :  { %3153 = vmatmul.mubr.msk.f32.vlgmr.msra.gmra.mrb[12].mxu1 %vm362_vm3, %v957_v50 }
 0x507   :  { %v452_v51 = vpop.xlane.xlu0 %451 }
 0x508   :  { %v454_v56 = vsub.f32 %v443_v29, %v452_v51 }
 0x50a   :  { %v457_v58 = vmul.f32 1.442695, %v454_v56 }
 0x50c   :  { %3614 = vpow2.f32 %v457_v58 }
 0x50d   :  { %3616 = vpow2.f32 %v455_v60 }
 0x516   :  { %v3615_v10 = vpop.eup %3614 }
 0x517   :  { %v3617_v12 = vpop.eup %3616  ;;  %v462_v13 = vsel %vm446_vm5, %v3615_v10, 0.0 }
 0x518   :  { %v459_v14 = vsel %vm446_vm5, %v3617_v12, 0.0 }
 0x5ac   :  { %v3967_v53 = vpop.f32.mrb[8].mxu1 }
 0x5ad   :  { %v3969_v54 = vpop.f32.mrb[9].mxu1 }
 0x5b4   :  { %v3140_v61 = vpop.f32.mrb[10].mxu1 }
 0x5b5   :  { %v840_v62 = vadd.f32 %v3140_v61, %v3921_v5  ;;  %v834_v63 = vpop.f32.mrb[11].mxu1 }
 0x5b6   :  { %v835_v0 = vadd.f32 %v834_v63, %v3926_v7 }
 0x5b7   :  { %v846_v1 = vsel %vm446_vm5, %v840_v62, -inf }
 0x5b8   :  { %847 = vmax.xlane.f32.xlu1 %v846_v1  ;;  %v843_v2 = vsel %vm446_vm5, %v835_v0, -inf }
 0x5b9   :  { %844 = vmax.xlane.f32.xlu0 %v843_v2  ;;  %v2825_v2 = vld [vmem:[%s4306_s6] ss:$0 sm:$0xff] }
 0x5bc   :  { %v3154_v3 = vpop.f32.mrb[12].mxu1 }
 0x5bd   :  { %v1042_v4 = vadd.f32 %v3154_v3, %v3921_v5  ;;  %v1036_v6 = vpop.f32.mrb[13].mxu1 }
 0x5be   :  { %v1037_v8 = vadd.f32 %v1036_v6, %v3926_v7 }
 0x5bf   :  { %v1048_v9 = vsel %vm446_vm5, %v1042_v4, -inf }
 0x5c0   :  { %1049 = vmax.xlane.f32.xlu1 %v1048_v9  ;;  %v1045_v11 = vsel %vm446_vm5, %v1037_v8, -inf }
 0x5c1   :  { %1046 = vmax.xlane.f32.xlu0 %v1045_v11 }
 0x5c4   :  { %463 = vadd.xlane.f32.xlu1 %v462_v13 }
 0x5c5   :  { %460 = vadd.xlane.f32.xlu0 %v459_v14 }
 0x645   :  { %v848_v15 = vpop.xlane.xlu1 %847 }
 0x646   :  { %v850_v16 = vsub.f32 %v840_v62, %v848_v15  ;;  %v845_v17 = vpop.xlane.xlu0 %844 }
 0x647   :  { %v849_v18 = vsub.f32 %v835_v0, %v845_v17 }
 0x648   :  { %v853_v19 = vmul.f32 1.442695, %v850_v16 }
 0x649   :  { %v851_v20 = vmul.f32 1.442695, %v849_v18 }
 0x64a   :  { %3618 = vpow2.f32 %v853_v19 }
 0x64b   :  { %3620 = vpow2.f32 %v851_v20 }
 0x64d   :  { %v1050_v21 = vpop.xlane.xlu1 %1049 }
 0x64e   :  { %v1052_v22 = vsub.f32 %v1042_v4, %v1050_v21  ;;  %v1047_v23 = vpop.xlane.xlu0 %1046 }
 0x64f   :  { %v1051_v24 = vsub.f32 %v1037_v8, %v1047_v23 }
 0x650   :  { %v1055_v25 = vmul.f32 1.442695, %v1052_v22  ;;  %v176_v22 = vld [vmem:[%s4307_s7 + $0x8] sm:$0xff] }
 0x651   :  { %v1053_v26 = vmul.f32 1.442695, %v1051_v24  ;;  %v464_v27 = vpop.xlane.xlu1 %463  ;;  %v177_v24 = vld [vmem:[%s4307_s7 + $0x10] sm:$0xff] }
 0x652   :  { %3622 = vpow2.f32 %v1055_v25  ;;  %v461_v28 = vpop.xlane.xlu0 %460  ;;  %v178_v25 = vld [vmem:[%s4307_s7 + $0x18] sm:$0xff] }
 0x653   :  { %3624 = vpow2.f32 %v1053_v26  ;;  %v3403_v26 = vpack.c.bf16 %v178_v25, %v177_v24  ;;  %v2839_v24 = vld [vmem:[%s4302_s3 + $0x38] sm:$0xff] }
 0x654   :  { %v3619_v29 = vpop.eup %3618  ;;  %3626 = vrcp.f32 %v464_v27  ;;  %v180_v27 = vld [vmem:[%s4308_s9] sm:$0xff] }
 0x655   :  { %v3621_v30 = vpop.eup %3620  ;;  %3628 = vrcp.f32 %v461_v28  ;;  %v858_v31 = vsel %vm446_vm5, %v3619_v29, 0.0  ;;  %v181_v28 = vld [vmem:[%s4308_s9 + $0x8] sm:$0xff] }
 0x656   :  { %859 = vadd.xlane.f32.xlu1 %v858_v31  ;;  %v855_v32 = vsel %vm446_vm5, %v3621_v30, 0.0  ;;  %v183_v31 = vld [vmem:[%s4308_s9 + $0x18] sm:$0xff] }
 0x657   :  { %856 = vadd.xlane.f32.xlu0 %v855_v32 }
 0x65c   :  { %v3623_v33 = vpop.eup %3622 }
 0x65d   :  { %v3625_v34 = vpop.eup %3624  ;;  %v1060_v35 = vsel %vm446_vm5, %v3623_v33, 0.0 }
 0x65e   :  { %v3627_v36 = vpop.eup %3626  ;;  %1061 = vadd.xlane.f32.xlu1 %v1060_v35  ;;  %v1057_v37 = vsel %vm446_vm5, %v3625_v34, 0.0 }
 0x65f   :  { %v3629_v38 = vpop.eup %3628  ;;  %1058 = vadd.xlane.f32.xlu0 %v1057_v37  ;;  %v468_v40 = vmul.f32 %v3627_v36, %v3615_v10 }
 0x660   :  { %v467_v39 = vmul.f32 %v3629_v38, %v3617_v12 }
 0x662   :  { %3131 = vmatprep.mubr.msk.f32.mxu0 %vm446_vm5, %v467_v39 }
 0x663   :  { %3132 = vmatmul.mubr.msk.f32.vlgmr.msra.gmra.mrb[2].mxu0 %vm446_vm5, %v468_v40 }
 0x66f   :  { %3567 = vrot.lane.b32.xlu1 %v3896_v55, %s4320_s19 }
 0x675   :  { %3562 = vrot.lane.b32.xlu0 %v3896_v55, %s4323_s1 }
 0x6e3   :  { %v860_v42 = vpop.xlane.xlu1 %859 }
 0x6e4   :  { %v857_v41 = vpop.xlane.xlu0 %856 }
 0x6e5   :  { %3630 = vrcp.f32 %v857_v41 }
 0x6e6   :  { %3632 = vrcp.f32 %v860_v42 }
 0x6eb   :  { %v1062_v45 = vpop.xlane.xlu1 %1061 }
 0x6ec   :  { %v1059_v46 = vpop.xlane.xlu0 %1058 }
 0x6ed   :  { %3634 = vrcp.f32 %v1059_v46 }
 0x6ee   :  { %3636 = vrcp.f32 %v1062_v45  ;;  %v2826_v45 = vld [vmem:[%s4309_s11] ss:$0 sm:$0xff] }
 0x6ef   :  { %v3631_v47 = vpop.eup %3630  ;;  %v3568_v48 = vpop.permute.xlu1 %3567 }
 0x6f0   :  { %v3563_v49 = vpop.permute.xlu0 %3562  ;;  %v863_v50 = vmul.f32 %v3631_v47, %v3621_v30  ;;  %v3570_v51 = vunpack.i.h.bf16 %v3568_v48  ;;  %v3569_v52 = vunpack.i.l.bf16 %v3568_v48  ;;  %v3633_v55 = vpop.eup %3632  ;;  %v3407_v30 = vpack.c.bf16 %v181_v28, %v180_v27  ;;  %v2842_v27 = vld [vmem:[%s4303_s5 + $0x28] sm:$0xff] }
 0x6f1   :  { %v3565_v56 = vunpack.i.h.bf16 %v3563_v49  ;;  %v3564_v57 = vunpack.i.l.bf16 %v3563_v49  ;;  %v864_v62 = vmul.f32 %v3633_v55, %v3619_v29  ;;  %v182_v29 = vld [vmem:[%s4308_s9 + $0x10] sm:$0xff]  ;;  %v2827_v49 = vld [vmem:[%s4310_s12] ss:$0 sm:$0xff] }
 0x6f2   :  { %3145 = vmatprep.mubr.msk.f32.mxu0 %vm446_vm5, %v863_v50  ;;  %v3395_v60 = vpack.c.bf16 %v3570_v51, %v3569_v52  ;;  %v3411_v32 = vpack.c.bf16 %v183_v31, %v182_v29  ;;  %3408 = vmatprep.subr.bf16.mxu1 %v3407_v30 }
 0x6f3   :  { %v3385_v58 = vpack.c.bf16 %v3565_v56, %v3564_v57  ;;  %3410 = vmatpush3.bf16.msra.mxu1 %v3407_v30  ;;  %v186_v57 = vld [vmem:[%s4308_s9 + $0x30] sm:$0xff] }
 0x6f4   :  { %3412 = vmatprep.subr.bf16.mxu1 %v3411_v32 }
 0x6f5   :  { %3386 = vmatprep.subr.bf16.mxu0 %v3385_v58 }
 0x6f6   :  { %3388 = vmatpush3.bf16.msra.mxu0 %v3385_v58  ;;  %v187_v58 = vld [vmem:[%s4308_s9 + $0x38] sm:$0xff] }
 0x6f7   :  { %v3635_v61 = vpop.eup %3634  ;;  %3396 = vmatprep.subr.bf16.mxu0 %v3395_v60  ;;  %3414 = vmatpush3.bf16.msra.mxu1 %v3411_v32  ;;  %v3419_v55 = vpack.c.bf16 %v187_v58, %v186_v57 }
 0x6f8   :  { %v1065_v63 = vmul.f32 %v3635_v61, %v3625_v34  ;;  %v3637_v0 = vpop.eup %3636  ;;  %v185_v34 = vld [vmem:[%s4308_s9 + $0x28] sm:$0xff] }
 0x6f9   :  { %3146 = vmatmul.mubr.msk.f32.vlgmr.msra.gmra.mrb[2].mxu0 %vm446_vm5, %v864_v62  ;;  %v1066_v1 = vmul.f32 %v3637_v0, %v3623_v33  ;;  %v184_v33 = vld [vmem:[%s4308_s9 + $0x20] sm:$0xff] }
 0x6fa   :  { %3398 = vmatpush3.bf16.msra.mxu0 %v3395_v60  ;;  %3159 = vmatprep.mubr.msk.f32.mxu0 %vm446_vm5, %v1065_v63  ;;  %v3415_v35 = vpack.c.bf16 %v185_v34, %v184_v33  ;;  %v2828_v60 = vld [vmem:[%s4311_s8] ss:$0 sm:$0xff] }
 0x6fc   :  { %3416 = vmatprep.subr.bf16.mxu1 %v3415_v35 }
 0x6fd   :  { %3418 = vmatpush3.bf16.msra.mxu1 %v3415_v35 }
 0x6fe   :  { %3420 = vmatprep.subr.bf16.mxu1 %v3419_v55 }
 0x701   :  { %3160 = vmatmul.mubr.msk.f32.vlgmr.msra.gmra.mrb[2].mxu0 %vm446_vm5, %v1066_v1  ;;  %3422 = vmatpush3.bf16.msra.mxu1 %v3419_v55 }
 0x7d4   :  { %v3161_v3 = vpop.f32.mrb[2].mxu0 }
 0x7d5   :  { %v3509_v4 = vadd.f32 %v3161_v3, %v3967_v53  ;;  %v1145_v6 = vpop.f32.mrb[3].mxu0  ;;  %v2831_v3 = vld [vmem:[%s4312_s10] ss:$0 sm:$0xff] }
 0x7d6   :  { %v3510_v8 = vadd.f32 %v1145_v6, %v3969_v54 }
 0x7d7   :  { %v1163_v9 = vadd.f32 %v3509_v4, %v2825_v2 }
 0x7d8   :  { %v1162_v10 = vadd.f32 %v3510_v8, %v2825_v2 }
 0x7d9   :  { %v1165_v11 = vadd.f32 %v3870_v43, %v1163_v9 }
 0x7da   :  { %v1164_v12 = vadd.f32 %v1162_v10, %v3872_v44  ;;  %v175_v44 = vld [vmem:[%s4307_s7] sm:$0xff] }
 0x7db   :  { %v1169_v13 = vsel %vm199_vm2, %v1165_v11, 0.0  ;;  %v3399_v23 = vpack.c.bf16 %v176_v22, %v175_v44  ;;  %v2837_v44 = vld [vmem:[%s4302_s3 + $0x28] sm:$0xff] }
 0x7dc   :  { %1170 = vadd.xlane.f32.xlu0 %v1169_v13  ;;  %v1166_v14 = vsel %vm199_vm2, %v1164_v12, 0.0 }
 0x7dd   :  { %1167 = vadd.xlane.f32.xlu1 %v1166_v14  ;;  %3400 = vmatprep.subr.bf16.mxu0 %v3399_v23 }
 0x7de   :  { %3402 = vmatpush3.bf16.msra.mxu0 %v3399_v23  ;;  %v2838_v23 = vld [vmem:[%s4302_s3 + $0x30] sm:$0xff] }
 0x7df   :  { %3404 = vmatprep.subr.bf16.mxu0 %v3403_v26  ;;  %v3427_v25 = vpack.c.bf16 %v2839_v24, %v2838_v23 }
 0x7e2   :  { %3406 = vmatpush3.bf16.msra.mxu0 %v3403_v26  ;;  %v2841_v26 = vld [vmem:[%s4303_s5 + $0x20] sm:$0xff] }
 0x7e3   :  { %v3431_v28 = vpack.c.bf16 %v2842_v27, %v2841_v26 }
 0x869   :  { %v1171_v15 = vpop.xlane.xlu0 %1170 }
 0x86a   :  { %v1174_v16 = vmul.f32 0.03125, %v1171_v15  ;;  %v1168_v17 = vpop.xlane.xlu1 %1167 }
 0x86b   :  { %v1173_v18 = vmul.f32 0.03125, %v1168_v17 }
 0x86c   :  { %v1176_v53 = vsub.f32 %v1165_v11, %v1174_v16 }
 0x86d   :  { %v1175_v19 = vsub.f32 %v1164_v12, %v1173_v18 }
 0x86e   :  { %v1178_v20 = vmul.f32 %v1176_v53, %v1176_v53 }
 0x86f   :  { %v1177_v54 = vmul.f32 %v1175_v19, %v1175_v19 }
 0x870   :  { %v1182_v21 = vsel %vm199_vm2, %v1178_v20, 0.0 }
 0x871   :  { %1183 = vadd.xlane.f32.xlu1 %v1182_v21  ;;  %v1179_v43 = vsel %vm199_vm2, %v1177_v54, 0.0 }
 0x872   :  { %1180 = vadd.xlane.f32.xlu0 %v1179_v43  ;;  %v2836_v43 = vld [vmem:[%s4302_s3 + $0x20] sm:$0xff] }
 0x873   :  { %v3423_v22 = vpack.c.bf16 %v2837_v44, %v2836_v43 }
 0x875   :  { %3424 = vmatprep.subr.bf16.mxu0 %v3423_v22 }
 0x8fe   :  { %v1184_v36 = vpop.xlane.xlu1 %1183 }
 0x8ff   :  { %v1186_v37 = vmul.f32 0.03125, %v1184_v36  ;;  %v1181_v38 = vpop.xlane.xlu0 %1180  ;;  %v2834_v36 = vld [vmem:[%s4313_s13] ss:$0 sm:$0xff] }
 0x900   :  { %v1185_v39 = vmul.f32 0.03125, %v1181_v38 }
 0x901   :  { %v1188_v40 = vadd.f32 1e-05, %v1186_v37 }
 0x902   :  { %v1187_v41 = vadd.f32 1e-05, %v1185_v39 }
 0x903   :  { %3638 = vrsqrt.f32 %v1188_v40  ;;  %v2835_v40 = vld [vmem:[%s4314_s14] ss:$0 sm:$0xff] }
 0x904   :  { %3640 = vrsqrt.f32 %v1187_v41 }
 0x90d   :  { %v3639_v42 = vpop.eup %3638 }
 0x90e   :  { %v3641_v46 = vpop.eup %3640  ;;  %v1192_v47 = vmul.f32 %v3639_v42, %v1176_v53 }
 0x90f   :  { %v1191_v48 = vmul.f32 %v3641_v46, %v1175_v19  ;;  %v2844_v46 = vld [vmem:[%s4303_s5 + $0x38] sm:$0xff] }
 0x910   :  { %v1200_v50 = vmul.f32 %v2826_v45, %v1192_v47 }
 0x911   :  { %v1199_v51 = vmul.f32 %v2826_v45, %v1191_v48  ;;  %v2843_v45 = vld [vmem:[%s4303_s5 + $0x30] sm:$0xff] }
 0x912   :  { %v1208_v56 = vadd.f32 %v2827_v49, %v1200_v50  ;;  %v2864_v50 = vld [vmem:[%s4304_s4 + $0x1] ss:$0 sm:$0xff]  ;;  %s4331_s4 = smov 72  }
 0x913   :  { %v1207_v52 = vadd.f32 %v2827_v49, %v1199_v51  ;;  %v3435_v49 = vpack.c.bf16 %v2844_v46, %v2843_v45 }
 0x915   :  { %3170 = vmatprep.mubr.msk.f32.mxu0 %vm199_vm2, %v1207_v52 }
 0x916   :  { %3171 = vmatmul.mubr.msk.f32.vlgmr.msra.gmra.mrb[4].mxu0 %vm199_vm2, %v1208_v56 }
 0x917   :  { %3426 = vmatpush3.bf16.msra.mxu0 %v3423_v22 }
 0x918   :  { %3428 = vmatprep.subr.bf16.mxu0 %v3427_v25 }
 0x91b   :  { %3430 = vmatpush3.bf16.msra.mxu0 %v3427_v25 }
 0x91c   :  { %3432 = vmatprep.subr.bf16.mxu0 %v3431_v28 }
 0x9e9   :  { %v3172_v61 = vpop.f32.mrb[4].mxu0 }
 0x9ea   :  { %v1293_v62 = vadd.f32 %v3172_v61, %v2828_v60  ;;  %v1287_v63 = vpop.f32.mrb[5].mxu0 }
 0x9eb   :  { %v1288_v0 = vadd.f32 %v2828_v60, %v1287_v63 }
 0x9ec   :  { %v1297_v2 = vmax.f32 %v1293_v62, 0.0 }
 0x9ed   :  { %v1296_v1 = vmax.f32 %v1288_v0, 0.0 }
 0x9ef   :  { %3189 = vmatprep.mubr.msk.f32.mxu1 %vm1304_vm6, %v1296_v1 }
 0x9f0   :  { %3190 = vmatmul.mubr.msk.f32.vlgmr.msra.gmra.mrb[14].mxu1 %vm1304_vm6, %v1297_v2 }
 0xac3   :  { %v3191_v4 = vpop.f32.mrb[14].mxu1 }
 0xac4   :  { %v1383_v6 = vadd.f32 %v3191_v4, %v2831_v3  ;;  %v1377_v8 = vpop.f32.mrb[15].mxu1 }
 0xac5   :  { %v1378_v9 = vadd.f32 %v2831_v3, %v1377_v8 }
 0xac6   :  { %v1387_v10 = vadd.f32 %v1383_v6, %v1208_v56 }
 0xac7   :  { %v1386_v11 = vadd.f32 %v1378_v9, %v1207_v52 }
 0xac8   :  { %v1391_v12 = vsel %vm199_vm2, %v1387_v10, 0.0 }
 0xac9   :  { %1392 = vadd.xlane.f32.xlu1 %v1391_v12  ;;  %v1388_v13 = vsel %vm199_vm2, %v1386_v11, 0.0 }
 0xaca   :  { %1389 = vadd.xlane.f32.xlu0 %v1388_v13 }
 0xb56   :  { %v1393_v14 = vpop.xlane.xlu1 %1392 }
 0xb57   :  { %v1395_v15 = vmul.f32 0.03125, %v1393_v14  ;;  %v1390_v16 = vpop.xlane.xlu0 %1389 }
 0xb58   :  { %v1394_v17 = vmul.f32 0.03125, %v1390_v16 }
 0xb59   :  { %v1397_v18 = vsub.f32 %v1387_v10, %v1395_v15 }
 0xb5a   :  { %v1396_v53 = vsub.f32 %v1386_v11, %v1394_v17 }
 0xb5b   :  { %v1399_v19 = vmul.f32 %v1397_v18, %v1397_v18 }
 0xb5c   :  { %v1398_v20 = vmul.f32 %v1396_v53, %v1396_v53 }
 0xb5d   :  { %v1403_v54 = vsel %vm199_vm2, %v1399_v19, 0.0 }
 0xb5e   :  { %1404 = vadd.xlane.f32.xlu1 %v1403_v54  ;;  %v1400_v21 = vsel %vm199_vm2, %v1398_v20, 0.0 }
 0xb5f   :  { %1401 = vadd.xlane.f32.xlu0 %v1400_v21 }
 0xbeb   :  { %v1405_v29 = vpop.xlane.xlu1 %1404 }
 0xbec   :  { %v1407_v30 = vmul.f32 0.03125, %v1405_v29  ;;  %v1402_v31 = vpop.xlane.xlu0 %1401 }
 0xbed   :  { %v1406_v32 = vmul.f32 0.03125, %v1402_v31 }
 0xbee   :  { %v1409_v33 = vadd.f32 1e-05, %v1407_v30 }
 0xbef   :  { %v1408_v34 = vadd.f32 1e-05, %v1406_v32 }
 0xbf0   :  { %3642 = vrsqrt.f32 %v1409_v33 }
 0xbf1   :  { %3644 = vrsqrt.f32 %v1408_v34 }
 0xbfa   :  { %v3643_v35 = vpop.eup %3642 }
 0xbfb   :  { %v3645_v37 = vpop.eup %3644  ;;  %v1413_v38 = vmul.f32 %v3643_v35, %v1397_v18 }
 0xbfc   :  { %v1412_v39 = vmul.f32 %v3645_v37, %v1396_v53 }
 0xbfd   :  { %v1421_v41 = vmul.f32 %v2834_v36, %v1413_v38 }
 0xbfe   :  { %v1420_v42 = vmul.f32 %v2834_v36, %v1412_v39 }
 0xbff   :  { %v4095_v48 = vadd.f32 %v2835_v40, %v1421_v41 }
 0xc00   :  { %v4093_v47 = vadd.f32 %v2835_v40, %v1420_v42 }
 0xc02   :  { %3200 = vmatprep.mubr.msk.f32.mxu0 %vm199_vm2, %v4093_v47 }
 0xc03   :  { %3201 = vmatmul.mubr.msk.f32.vlgmr.msra.gmra.mrb[6].mxu0 %vm199_vm2, %v4095_v48 }
 0xc04   :  { %3434 = vmatpush3.bf16.msra.mxu0 %v3431_v28  ;;  %3211 = vmatprep.mubr.msk.f32.mxu0 %vm199_vm2, %v4093_v47 }
 0xc05   :  { %3436 = vmatprep.subr.bf16.mxu0 %v3435_v49 }
 0xc08   :  { %3438 = vmatpush3.bf16.msra.mxu0 %v3435_v49 }
 0xc0b   :  { %3212 = vmatmul.mubr.msk.f32.vlgmr.msra.gmra.mrb[8].mxu0 %vm199_vm2, %v4095_v48 }
 0xcd6   :  { %v3202_v51 = vpop.f32.mrb[6].mxu0 }
 0xcd7   :  { %v4108_v52 = vadd.f32 %v3202_v51, %v2864_v50  ;;  %v1548_v56 = vpop.f32.mrb[7].mxu0 }
 0xcd8   :  { %v4110_v57 = vadd.f32 %v2864_v50, %v1548_v56 }
 0xcda   :  { %3218 = vmatprep.mubr.msk.f32.mxu1 %vm362_vm3, %v4110_v57  ;;  %v4116_v58 = vpack.i.bf16 %v4108_v52, %v4110_v57 }
 0xcdc   :  { %3577 = vrot.lane.b32.xlu1 %v4116_v58, %s3691_s23  ;;  %3572 = vrot.lane.b32.xlu0 %v4116_v58, %s3692_s24 }
 0xcde   :  { %v3213_v55 = vpop.f32.mrb[8].mxu0 }
 0xcdf   :  { %v1623_v60 = vpop.f32.mrb[9].mxu0 }
 0xce0   :  { %1743 = vrot.lane.b32.xlu1 %v4110_v57, %s3690_s22  ;;  %1745 = vrot.lane.b32.xlu0 %v4108_v52, %s3690_s22  ;;  %v4126_v61 = vpack.i.bf16 %v3213_v55, %v1623_v60  ;;  %v4128_v62 = vpack.c.bf16 %v3213_v55, %v1623_v60  ;;  %s4332_s22 = smov 64  }
 0xce4   :  { %3582 = vrot.lane.b32.xlu1 %v4116_v58, %s3696_s18  ;;  %2026 = vrot.lane.b32.xlu0 %v4110_v57, %s3694_s26 }
 0xce8   :  { %2028 = vrot.lane.b32.xlu1 %v4108_v52, %s3694_s26 }
 0xd4e   :  { %v3578_v63 = vpop.permute.xlu1 %3577  ;;  %v3573_v0 = vpop.permute.xlu0 %3572 }
 0xd4f   :  { %v3580_v1 = vunpack.i.h.bf16 %v3578_v63  ;;  %v3579_v2 = vunpack.i.l.bf16 %v3578_v63  ;;  %v3575_v3 = vunpack.i.h.bf16 %v3573_v0  ;;  %v3574_v4 = vunpack.i.l.bf16 %v3573_v0 }
 0xd51   :  { %v3439_v6 = vpack.c.bf16 %v3580_v1, %v3579_v2  ;;  %v3445_v8 = vpack.c.bf16 %v3575_v3, %v3574_v4 }
 0xd52   :  { %v1744_v9 = vpop.permute.xlu1 %1743  ;;  %v1746_v10 = vpop.permute.xlu0 %1745 }
 0xd53   :  { %3441 = vmatprep.subr.msk.bf16.mxu1 %vm3902_vm4, %v3439_v6  ;;  %3447 = vmatprep.subr.msk.bf16.mxu0 %vm3902_vm4, %v3445_v8 }
 0xd54   :  { %3225 = vmatprep.mubr.msk.f32.mxu0 %vm362_vm3, %v1744_v9  ;;  %3444 = vmatpush3.bf16.xpose.msk.msra.mxu1 %vm3902_vm4, %v3439_v6 }
 0xd55   :  { %3450 = vmatpush3.bf16.xpose.msk.msra.mxu0 %vm3902_vm4, %v3445_v8 }
 0xd56   :  { %v3583_v11 = vpop.permute.xlu1 %3582  ;;  %v2027_v15 = vpop.permute.xlu0 %2026 }
 0xd57   :  { %v3585_v12 = vunpack.i.h.bf16 %v3583_v11  ;;  %v3584_v13 = vunpack.i.l.bf16 %v3583_v11 }
 0xd59   :  { %v3459_v14 = vpack.c.bf16 %v3585_v12, %v3584_v13 }
 0xd5a   :  { %v2029_v16 = vpop.permute.xlu1 %2028 }
 0xd5b   :  { %3219 = vmatmul.mubr.msk.f32.vlgmr.msra.gmra.mrb[16].mxu1 %vm362_vm3, %v4108_v52  ;;  %3461 = vmatprep.subr.msk.bf16.mxu0 %vm3902_vm4, %v3459_v14 }
 0xd5c   :  { %3226 = vmatmul.mubr.msk.f32.vlgmr.msra.gmra.mrb[10].mxu0 %vm362_vm3, %v1746_v10 }
 0xd5d   :  { %3464 = vmatpush3.bf16.xpose.msk.msra.mxu0 %vm3902_vm4, %v3459_v14  ;;  %3246 = vmatprep.mubr.msk.f32.mxu0 %vm362_vm3, %v2027_v15 }
 0xd64   :  { %3247 = vmatmul.mubr.msk.f32.vlgmr.msra.gmra.mrb[12].mxu0 %vm362_vm3, %v2029_v16 }
 0xe2e   :  { %v3220_v17 = vpop.f32.mrb[16].mxu1 }
 0xe2f   :  { %v3227_v18 = vpop.f32.mrb[10].mxu0  ;;  %v1712_v53 = vpop.f32.mrb[17].mxu1  ;;  %v1718_v22 = vadd.f32 %v3220_v17, %v3921_v5 }
 0xe30   :  { %v1831_v19 = vadd.f32 %v3227_v18, %v3921_v5  ;;  %v1825_v20 = vpop.f32.mrb[11].mxu0  ;;  %v1713_v43 = vadd.f32 %v1712_v53, %v3926_v7 }
 0xe31   :  { %v1826_v54 = vadd.f32 %v1825_v20, %v3926_v7  ;;  %v1724_v29 = vsel %vm446_vm5, %v1718_v22, -inf }
 0xe32   :  { %v1837_v21 = vsel %vm446_vm5, %v1831_v19, -inf  ;;  %v1721_v24 = vsel %vm446_vm5, %v1713_v43, -inf }
 0xe33   :  { %1838 = vmax.xlane.f32.xlu1 %v1837_v21  ;;  %v1834_v44 = vsel %vm446_vm5, %v1826_v54, -inf }
 0xe34   :  { %1835 = vmax.xlane.f32.xlu0 %v1834_v44 }
 0xe37   :  { %v3248_v23 = vpop.f32.mrb[12].mxu0 }
 0xe38   :  { %v2108_v25 = vpop.f32.mrb[13].mxu0  ;;  %1722 = vmax.xlane.f32.xlu0 %v1721_v24  ;;  %v2114_v27 = vadd.f32 %v3248_v23, %v3921_v5 }
 0xe39   :  { %v2109_v26 = vadd.f32 %v2108_v25, %v3926_v7 }
 0xe3a   :  { %v2120_v30 = vsel %vm446_vm5, %v2114_v27, -inf }
 0xe3b   :  { %v2117_v28 = vsel %vm446_vm5, %v2109_v26, -inf }
 0xe3c   :  { %2118 = vmax.xlane.f32.xlu1 %v2117_v28  ;;  %1725 = vmax.xlane.f32.xlu0 %v1724_v29 }
 0xe40   :  { %2121 = vmax.xlane.f32.xlu0 %v2120_v30 }
 0xe4d   :  { %3587 = vrot.lane.b32.xlu1 %v4126_v61, %s3691_s23  ;;  %s4333_s23 = smov 104  }
 0xec0   :  { %v1839_v31 = vpop.xlane.xlu1 %1838 }
 0xec1   :  { %v1841_v32 = vsub.f32 %v1831_v19, %v1839_v31  ;;  %v1836_v33 = vpop.xlane.xlu0 %1835 }
 0xec2   :  { %v1840_v34 = vsub.f32 %v1826_v54, %v1836_v33 }
 0xec3   :  { %v1844_v35 = vmul.f32 1.442695, %v1841_v32 }
 0xec4   :  { %v1842_v7 = vmul.f32 1.442695, %v1840_v34  ;;  %v3686_v34 = vld [vmem:[%s4305_s2 + $0x8] sm:$0xff] }
 0xec5   :  { %3646 = vpow2.f32 %v1844_v35  ;;  %v1723_v5 = vpop.xlane.xlu0 %1722 }
 0xec6   :  { %3648 = vpow2.f32 %v1842_v7  ;;  %v1727_v36 = vsub.f32 %v1713_v43, %v1723_v5  ;;  %v3687_v5 = vld [vmem:[%s4305_s2] sm:$0xff]  ;;  %s4334_s2 = smov 32  }
 0xec8   :  { %v1729_v37 = vmul.f32 1.442695, %v1727_v36 }
 0xec9   :  { %v2119_v38 = vpop.xlane.xlu1 %2118  ;;  %v1726_v39 = vpop.xlane.xlu0 %1725 }
 0xeca   :  { %3650 = vpow2.f32 %v1729_v37  ;;  %v1728_v40 = vsub.f32 %v1718_v22, %v1726_v39  ;;  %v2123_v9 = vsub.f32 %v2109_v26, %v2119_v38 }
 0xecc   :  { %v1731_v41 = vmul.f32 1.442695, %v1728_v40  ;;  %v2125_v10 = vmul.f32 1.442695, %v2123_v9 }
 0xecd   :  { %v3588_v42 = vpop.permute.xlu1 %3587  ;;  %v2122_v45 = vpop.xlane.xlu0 %2121 }
 0xece   :  { %v3590_v46 = vunpack.i.h.bf16 %v3588_v42  ;;  %v3589_v49 = vunpack.i.l.bf16 %v3588_v42  ;;  %v2124_v50 = vsub.f32 %v2114_v27, %v2122_v45  ;;  %3652 = vpow2.f32 %v1731_v41 }
 0xecf   :  { %v3647_v51 = vpop.eup %3646 }
 0xed0   :  { %v3649_v56 = vpop.eup %3648  ;;  %v3451_v55 = vpack.c.bf16 %v3590_v46, %v3589_v49  ;;  %v2127_v60 = vmul.f32 1.442695, %v2124_v50  ;;  %v1849_v63 = vsel %vm446_vm5, %v3647_v51, 0.0 }
 0xed1   :  { %1850 = vadd.xlane.f32.xlu0 %v1849_v63  ;;  %v1846_v0 = vsel %vm446_vm5, %v3649_v56, 0.0 }
 0xed2   :  { %3654 = vpow2.f32 %v2127_v60  ;;  %3452 = vmatprep.subr.bf16.mxu1 %v3451_v55  ;;  %1847 = vadd.xlane.f32.xlu1 %v1846_v0 }
 0xed3   :  { %3454 = vmatpush3.bf16.msra.mxu1 %v3451_v55  ;;  %3656 = vpow2.f32 %v2125_v10 }
 0xed4   :  { %v3651_v1 = vpop.eup %3650  ;;  %3456 = vmatprep.subr.bf16.mxu1 %v4128_v62 }
 0xed5   :  { %v1733_v2 = vsel %vm446_vm5, %v3651_v1, 0.0 }
 0xed6   :  { %1734 = vadd.xlane.f32.xlu1 %v1733_v2 }
 0xed8   :  { %v3653_v3 = vpop.eup %3652 }
 0xed9   :  { %v1736_v4 = vsel %vm446_vm5, %v3653_v3, 0.0 }
 0xeda   :  { %1737 = vadd.xlane.f32.xlu0 %v1736_v4 }
 0xedc   :  { %v3655_v6 = vpop.eup %3654 }
 0xedd   :  { %v2132_v8 = vsel %vm446_vm5, %v3655_v6, 0.0  ;;  %v3657_v11 = vpop.eup %3656 }
 0xede   :  { %2133 = vadd.xlane.f32.xlu0 %v2132_v8  ;;  %v2129_v12 = vsel %vm446_vm5, %v3657_v11, 0.0 }
 0xee7   :  { %3597 = vrot.lane.b32.xlu1 %v4116_v58, %s4331_s4 }
 0xef4   :  { %3592 = vrot.lane.b32.xlu0 %v4126_v61, %s4332_s22 }
 0xef8   :  { %2230 = vrot.lane.b32.xlu0 %v4108_v52, %s4333_s23 }
 0xf0b   :  { %2130 = vadd.xlane.f32.xlu1 %v2129_v12 }
 0xf1c   :  { %2228 = vrot.lane.b32.xlu1 %v4110_v57, %s4333_s23 }
 0xf5e   :  { %v1851_v13 = vpop.xlane.xlu0 %1850 }
 0xf5f   :  { %3658 = vrcp.f32 %v1851_v13  ;;  %v1848_v14 = vpop.xlane.xlu1 %1847 }
 0xf60   :  { %3660 = vrcp.f32 %v1848_v14 }
 0xf63   :  { %v1735_v58 = vpop.xlane.xlu1 %1734 }
 0xf64   :  { %3662 = vrcp.f32 %v1735_v58 }
 0xf67   :  { %v1738_v15 = vpop.xlane.xlu0 %1737  ;;  %v3598_v20 = vpop.permute.xlu1 %3597 }
 0xf68   :  { %3664 = vrcp.f32 %v1738_v15  ;;  %v3600_v44 = vunpack.i.h.bf16 %v3598_v20  ;;  %v3599_v22 = vunpack.i.l.bf16 %v3598_v20 }
 0xf69   :  { %v3659_v16 = vpop.eup %3658 }
 0xf6a   :  { %v3661_v17 = vpop.eup %3660  ;;  %v1855_v52 = vmul.f32 %v3659_v16, %v3647_v51  ;;  %v3469_v26 = vpack.c.bf16 %v3600_v44, %v3599_v22  ;;  %v2849_v44 = vld [vmem:[%s4307_s7 + $0x38] sm:$0xff] }
 0xf6b   :  { %v1854_v18 = vmul.f32 %v3661_v17, %v3649_v56  ;;  %v2134_v53 = vpop.xlane.xlu0 %2133 }
 0xf6c   :  { %3666 = vrcp.f32 %v2134_v53 }
 0xf6d   :  { %3232 = vmatprep.mubr.msk.f32.mxu1 %vm446_vm5, %v1854_v18 }
 0xf6e   :  { %v3663_v19 = vpop.eup %3662  ;;  %3233 = vmatmul.mubr.msk.f32.vlgmr.msra.gmra.mrb[18].mxu1 %vm446_vm5, %v1855_v52 }
 0xf6f   :  { %3458 = vmatpush3.bf16.msra.mxu1 %v4128_v62  ;;  %v1741_v57 = vmul.f32 %v3663_v19, %v3651_v1  ;;  %v3593_v54 = vpop.permute.xlu0 %3592 }
 0xf70   :  { %v3595_v21 = vunpack.i.h.bf16 %v3593_v54  ;;  %v3594_v43 = vunpack.i.l.bf16 %v3593_v54  ;;  %v2847_v54 = vld [vmem:[%s4307_s7 + $0x28] sm:$0xff] }
 0xf71   :  { %3239 = vmatprep.mubr.msk.f32.mxu1 %vm446_vm5, %v1741_v57 }
 0xf72   :  { %v3665_v23 = vpop.eup %3664  ;;  %v3465_v24 = vpack.c.bf16 %v3595_v21, %v3594_v43  ;;  %v2848_v43 = vld [vmem:[%s4307_s7 + $0x30] sm:$0xff] }
 0xf73   :  { %v1742_v25 = vmul.f32 %v3665_v23, %v3653_v3  ;;  %v2231_v32 = vpop.permute.xlu0 %2230  ;;  %v3483_v22 = vpack.c.bf16 %v2849_v44, %v2848_v43  ;;  %v2851_v23 = vld [vmem:[%s4308_s9 + $0x40] sm:$0xff]  ;;  %v3701_v43 = vmov 0.0  }
 0xf74   :  { %3466 = vmatprep.subr.bf16.mxu1 %v3465_v24 }
 0xf76   :  { %3240 = vmatmul.mubr.msk.f32.vlgmr.msra.gmra.mrb[18].mxu1 %vm446_vm5, %v1742_v25  ;;  %v3667_v27 = vpop.eup %3666 }
 0xf77   :  { %3468 = vmatpush3.bf16.msra.mxu1 %v3465_v24  ;;  %v2138_v30 = vmul.f32 %v3667_v27, %v3655_v6  ;;  %v2852_v24 = vld [vmem:[%s4308_s9 + $0x48] sm:$0xff] }
 0xf78   :  { %3471 = vmatprep.subr.msk.bf16.mxu1 %vm3902_vm4, %v3469_v26  ;;  %v3487_v25 = vpack.c.bf16 %v2852_v24, %v2851_v23 }
 0xf98   :  { %v2131_v62 = vpop.xlane.xlu1 %2130 }
 0xf99   :  { %3668 = vrcp.f32 %v2131_v62 }
 0xf9c   :  { %v2229_v31 = vpop.permute.xlu1 %2228 }
 0xfa3   :  { %v3669_v28 = vpop.eup %3668 }
 0xfa4   :  { %v2137_v29 = vmul.f32 %v3669_v28, %v3657_v11 }
 0xfa6   :  { %3253 = vmatprep.mubr.msk.f32.mxu1 %vm446_vm5, %v2137_v29 }
 0xfa7   :  { %3254 = vmatmul.mubr.msk.f32.vlgmr.msra.gmra.mrb[18].mxu1 %vm446_vm5, %v2138_v30 }
 0xfa8   :  { %3474 = vmatpush3.bf16.xpose.msk.msra.mxu1 %vm3902_vm4, %v3469_v26  ;;  %3260 = vmatprep.mubr.msk.f32.mxu1 %vm362_vm3, %v2229_v31 }
 0xfaf   :  { %3261 = vmatmul.mubr.msk.f32.vlgmr.msra.gmra.mrb[20].mxu1 %vm362_vm3, %v2231_v32  ;;  %v2894_v32 = vld [vmem:[%s4309_s11 + $0x1] ss:$0 sm:$0xff] }
0x1082   :  { %v3262_v33 = vpop.f32.mrb[20].mxu1 }
0x1083   :  { %v2316_v35 = vadd.f32 %v3686_v34, %v3262_v33  ;;  %v2310_v7 = vpop.f32.mrb[21].mxu1  ;;  %v2895_v34 = vld [vmem:[%s4310_s12 + $0x1] ss:$0 sm:$0xff] }
0x1084   :  { %v2311_v36 = vadd.f32 %v3687_v5, %v2310_v7 }
0x1085   :  { %v2322_v59 = vsel %vm446_vm5, %v2316_v35, -inf }
0x1086   :  { %2323 = vmax.xlane.f32.xlu0 %v2322_v59  ;;  %v2319_v37 = vsel %vm446_vm5, %v2311_v36, -inf  ;;  %v2853_v59 = vld [vmem:[%s4308_s9 + $0x50] sm:$0xff] }
0x1087   :  { %2320 = vmax.xlane.f32.xlu1 %v2319_v37  ;;  %v2854_v37 = vld [vmem:[%s4308_s9 + $0x58] sm:$0xff] }
0x1113   :  { %v2324_v38 = vpop.xlane.xlu0 %2323 }
0x1114   :  { %v2326_v39 = vsub.f32 %v2316_v35, %v2324_v38  ;;  %v2321_v40 = vpop.xlane.xlu1 %2320 }
0x1115   :  { %v2325_v41 = vsub.f32 %v2311_v36, %v2321_v40  ;;  %v3491_v40 = vpack.c.bf16 %v2854_v37, %v2853_v59 }
0x1116   :  { %v2329_v42 = vmul.f32 1.442695, %v2326_v39 }
0x1117   :  { %v2327_v45 = vmul.f32 1.442695, %v2325_v41  ;;  %v2855_v41 = vld [vmem:[%s4308_s9 + $0x60] sm:$0xff] }
0x1118   :  { %3670 = vpow2.f32 %v2329_v42  ;;  %v2856_v42 = vld [vmem:[%s4308_s9 + $0x68] sm:$0xff] }
0x1119   :  { %3672 = vpow2.f32 %v2327_v45  ;;  %v3495_v45 = vpack.c.bf16 %v2856_v42, %v2855_v41 }
0x1122   :  { %v3671_v46 = vpop.eup %3670 }
0x1123   :  { %v3673_v49 = vpop.eup %3672  ;;  %v2334_v50 = vsel %vm446_vm5, %v3671_v46, 0.0 }
0x1124   :  { %2335 = vadd.xlane.f32.xlu1 %v2334_v50  ;;  %v2331_v51 = vsel %vm446_vm5, %v3673_v49, 0.0 }
0x1125   :  { %2332 = vadd.xlane.f32.xlu0 %v2331_v51  ;;  %v2896_v51 = vld [vmem:[%s4311_s8 + $0x1] ss:$0 sm:$0xff] }
0x113b   :  { %3602 = vrot.lane.b32.xlu0 %v4126_v61, %s4334_s2  ;;  %v2893_v61 = vld [vmem:[%s4306_s6 + $0x1] ss:$0 sm:$0xff] }
0x11b1   :  { %v2336_v56 = vpop.xlane.xlu1 %2335 }
0x11b2   :  { %3674 = vrcp.f32 %v2336_v56  ;;  %v2333_v55 = vpop.xlane.xlu0 %2332 }
0x11b3   :  { %3676 = vrcp.f32 %v2333_v55 }
0x11b6   :  { %v3603_v60 = vpop.permute.xlu0 %3602 }
0x11b7   :  { %v3605_v63 = vunpack.i.h.bf16 %v3603_v60  ;;  %v3604_v0 = vunpack.i.l.bf16 %v3603_v60 }
0x11b9   :  { %v3475_v1 = vpack.c.bf16 %v3605_v63, %v3604_v0 }
0x11bb   :  { %3476 = vmatprep.subr.bf16.mxu1 %v3475_v1 }
0x11bc   :  { %v3675_v2 = vpop.eup %3674  ;;  %3478 = vmatpush3.bf16.msra.mxu1 %v3475_v1 }
0x11bd   :  { %v3677_v3 = vpop.eup %3676  ;;  %v2340_v6 = vmul.f32 %v3675_v2, %v3671_v46  ;;  %v2857_v46 = vld [vmem:[%s4308_s9 + $0x70] sm:$0xff]  ;;  %v2899_v2 = vld [vmem:[%s4312_s10 + $0x1] ss:$0 sm:$0xff] }
0x11be   :  { %v2339_v4 = vmul.f32 %v3677_v3, %v3673_v49  ;;  %v2858_v49 = vld [vmem:[%s4308_s9 + $0x78] sm:$0xff] }
0x11bf   :  { %v3499_v50 = vpack.c.bf16 %v2858_v49, %v2857_v46 }
0x11c0   :  { %3267 = vmatprep.mubr.msk.f32.mxu1 %vm446_vm5, %v2339_v4 }
0x11c1   :  { %3268 = vmatmul.mubr.msk.f32.vlgmr.msra.gmra.mrb[18].mxu1 %vm446_vm5, %v2340_v6 }
0x11c2   :  { %3308 = vmatprep.mubr.msk.f32.mxu1 %vm3700_vm7, %v3701_v43 }
0x1294   :  { %v3269_v8 = vpop.f32.mrb[18].mxu1 }
0x1295   :  { %v2419_v9 = vpop.f32.mrb[19].mxu1  ;;  %v2437_v10 = vadd.f32 %v3269_v8, %v2893_v61 }
0x1296   :  { %v2436_v11 = vadd.f32 %v2893_v61, %v2419_v9 }
0x1297   :  { %v2439_v14 = vadd.f32 %v2437_v10, %v4095_v48  ;;  %v2846_v48 = vld [vmem:[%s4307_s7 + $0x20] sm:$0xff] }
0x1298   :  { %v2438_v12 = vadd.f32 %v2436_v11, %v4093_v47  ;;  %v3479_v21 = vpack.c.bf16 %v2847_v54, %v2846_v48  ;;  %v2705_v48 = vld [vmem:[%s4315_s15 + $0x10] sm:$0xff]  ;;  %v2706_v54 = vld [vmem:[%s4315_s15 + $0x18] sm:$0xff] }
0x1299   :  { %v2443_v58 = vsel %vm199_vm2, %v2439_v14, 0.0 }
0x129a   :  { %v2440_v13 = vsel %vm199_vm2, %v2438_v12, 0.0  ;;  %3480 = vmatprep.subr.bf16.mxu0 %v3479_v21 }
0x129b   :  { %2441 = vadd.xlane.f32.xlu1 %v2440_v13  ;;  %3482 = vmatpush3.bf16.msra.mxu0 %v3479_v21  ;;  %v3507_v21 = vpack.c.bf16 %v2706_v54, %v2705_v48 }
0x129c   :  { %3484 = vmatprep.subr.bf16.mxu0 %v3483_v22 }
0x129f   :  { %2444 = vadd.xlane.f32.xlu1 %v2443_v58  ;;  %3486 = vmatpush3.bf16.msra.mxu0 %v3483_v22 }
0x12a0   :  { %3488 = vmatprep.subr.bf16.mxu0 %v3487_v25 }
0x1328   :  { %v2442_v15 = vpop.xlane.xlu1 %2441 }
0x1329   :  { %v2446_v16 = vmul.f32 0.03125, %v2442_v15 }
0x132b   :  { %v2448_v17 = vsub.f32 %v2438_v12, %v2446_v16 }
0x132c   :  { %v2445_v18 = vpop.xlane.xlu1 %2444 }
0x132d   :  { %v2447_v52 = vmul.f32 0.03125, %v2445_v18  ;;  %v2450_v53 = vmul.f32 %v2448_v17, %v2448_v17 }
0x132f   :  { %v2449_v19 = vsub.f32 %v2439_v14, %v2447_v52  ;;  %v2452_v20 = vsel %vm199_vm2, %v2450_v53, 0.0 }
0x1330   :  { %2453 = vadd.xlane.f32.xlu1 %v2452_v20  ;;  %v2704_v20 = vld [vmem:[%s4315_s15 + $0x8] sm:$0xff] }
0x1331   :  { %v2451_v57 = vmul.f32 %v2449_v19, %v2449_v19 }
0x1333   :  { %v2455_v47 = vsel %vm199_vm2, %v2451_v57, 0.0 }
0x1334   :  { %2456 = vadd.xlane.f32.xlu1 %v2455_v47  ;;  %v3699_v47 = vmov 0.0|0.0  }
0x1335   :  { %3503 = vmatprep.subr.bf16.mxu1 %v3699_v47 }
0x13bd   :  { %v2454_v26 = vpop.xlane.xlu1 %2453 }
0x13be   :  { %v2458_v62 = vmul.f32 0.03125, %v2454_v26 }
0x13c0   :  { %v2460_v27 = vadd.f32 1e-05, %v2458_v62 }
0x13c1   :  { %v2457_v28 = vpop.xlane.xlu1 %2456 }
0x13c2   :  { %3678 = vrsqrt.f32 %v2460_v27  ;;  %v2459_v29 = vmul.f32 0.03125, %v2457_v28  ;;  %v2902_v27 = vld [vmem:[%s4313_s13 + $0x1] ss:$0 sm:$0xff] }
0x13c4   :  { %v2461_v30 = vadd.f32 1e-05, %v2459_v29  ;;  %v2903_v29 = vld [vmem:[%s4314_s14 + $0x1] ss:$0 sm:$0xff] }
0x13c6   :  { %3680 = vrsqrt.f32 %v2461_v30 }
0x13cc   :  { %v3679_v31 = vpop.eup %3678 }
0x13cd   :  { %v2464_v33 = vmul.f32 %v3679_v31, %v2448_v17 }
0x13cf   :  { %v2472_v35 = vmul.f32 %v2894_v32, %v2464_v33 }
0x13d0   :  { %v3681_v7 = vpop.eup %3680 }
0x13d1   :  { %v2465_v5 = vmul.f32 %v3681_v7, %v2449_v19  ;;  %v2480_v36 = vadd.f32 %v2895_v34, %v2472_v35  ;;  %v2703_v19 = vld [vmem:[%s4315_s15] sm:$0xff] }
0x13d2   :  { %v3504_v57 = vpack.c.bf16 %v2704_v20, %v2703_v19 }
0x13d3   :  { %v2473_v38 = vmul.f32 %v2894_v32, %v2465_v5  ;;  %3278 = vmatprep.mubr.msk.f32.mxu0 %vm199_vm2, %v2480_v36  ;;  %v2904_v5 = vld [vmem:[%s4316_s16] ss:$0 sm:$0xff] }
0x13d4   :  { %3505 = vmatpush3.bf16.msra.mxu1 %v3504_v57 }
0x13d5   :  { %v2481_v39 = vadd.f32 %v2895_v34, %v2473_v38  ;;  %3506 = vmatprep.subr.bf16.mxu1 %v3699_v47 }
0x13d7   :  { %3279 = vmatmul.mubr.msk.f32.vlgmr.msra.gmra.mrb[14].mxu0 %vm199_vm2, %v2481_v39 }
0x13d8   :  { %3490 = vmatpush3.bf16.msra.mxu0 %v3487_v25  ;;  %3508 = vmatpush3.bf16.msra.mxu1 %v3507_v21 }
0x13d9   :  { %3492 = vmatprep.subr.bf16.mxu0 %v3491_v40 }
0x13dc   :  { %3494 = vmatpush3.bf16.msra.mxu0 %v3491_v40 }
0x13dd   :  { %3496 = vmatprep.subr.bf16.mxu0 %v3495_v45 }
0x13e0   :  { %3498 = vmatpush3.bf16.msra.mxu0 %v3495_v45 }
0x13e1   :  { %3500 = vmatprep.subr.bf16.mxu0 %v3499_v50 }
0x13e4   :  { %3502 = vmatpush3.bf16.msra.mxu0 %v3499_v50 }
0x14aa   :  { %v3280_v56 = vpop.f32.mrb[14].mxu0 }
0x14ab   :  { %v2566_v55 = vadd.f32 %v3280_v56, %v2896_v51  ;;  %v2560_v60 = vpop.f32.mrb[15].mxu0 }
0x14ac   :  { %v2561_v63 = vadd.f32 %v2896_v51, %v2560_v60 }
0x14ad   :  { %v2570_v1 = vmax.f32 %v2566_v55, 0.0 }
0x14ae   :  { %v2569_v0 = vmax.f32 %v2561_v63, 0.0 }
0x14b0   :  { %3297 = vmatprep.mubr.msk.f32.mxu0 %vm1304_vm6, %v2569_v0 }
0x14b1   :  { %3298 = vmatmul.mubr.msk.f32.vlgmr.msra.gmra.mrb[16].mxu0 %vm1304_vm6, %v2570_v1 }
0x1584   :  { %v3299_v3 = vpop.f32.mrb[16].mxu0 }
0x1585   :  { %v2649_v4 = vpop.f32.mrb[17].mxu0  ;;  %v2655_v6 = vadd.f32 %v3299_v3, %v2899_v2 }
0x1586   :  { %v2650_v61 = vadd.f32 %v2899_v2, %v2649_v4 }
0x1587   :  { %v2659_v10 = vadd.f32 %v2655_v6, %v2481_v39 }
0x1588   :  { %v2658_v8 = vadd.f32 %v2650_v61, %v2480_v36 }
0x1589   :  { %v2663_v11 = vsel %vm199_vm2, %v2659_v10, 0.0 }
0x158a   :  { %v2660_v9 = vsel %vm199_vm2, %v2658_v8, 0.0 }
0x158b   :  { %2661 = vadd.xlane.f32.xlu1 %v2660_v9 }
0x158f   :  { %2664 = vadd.xlane.f32.xlu1 %v2663_v11 }
0x1618   :  { %v2662_v12 = vpop.xlane.xlu1 %2661 }
0x1619   :  { %v2666_v13 = vmul.f32 0.03125, %v2662_v12 }
0x161b   :  { %v2668_v14 = vsub.f32 %v2658_v8, %v2666_v13 }
0x161c   :  { %v2665_v58 = vpop.xlane.xlu1 %2664 }
0x161d   :  { %v2667_v15 = vmul.f32 0.03125, %v2665_v58  ;;  %v2670_v16 = vmul.f32 %v2668_v14, %v2668_v14 }
0x161f   :  { %v2669_v17 = vsub.f32 %v2659_v10, %v2667_v15  ;;  %v2672_v18 = vsel %vm199_vm2, %v2670_v16, 0.0 }
0x1620   :  { %2673 = vadd.xlane.f32.xlu0 %v2672_v18 }
0x1621   :  { %v2671_v52 = vmul.f32 %v2669_v17, %v2669_v17 }
0x1623   :  { %v2675_v53 = vsel %vm199_vm2, %v2671_v52, 0.0 }
0x1624   :  { %2676 = vadd.xlane.f32.xlu1 %v2675_v53 }
0x16ad   :  { %v2674_v44 = vpop.xlane.xlu0 %2673 }
0x16ae   :  { %v2678_v22 = vmul.f32 0.03125, %v2674_v44 }
0x16b0   :  { %v2680_v23 = vadd.f32 1e-05, %v2678_v22 }
0x16b1   :  { %v2677_v24 = vpop.xlane.xlu1 %2676 }
0x16b2   :  { %3682 = vrsqrt.f32 %v2680_v23  ;;  %v2679_v25 = vmul.f32 0.03125, %v2677_v24 }
0x16b4   :  { %v2681_v26 = vadd.f32 1e-05, %v2679_v25 }
0x16b6   :  { %3684 = vrsqrt.f32 %v2681_v26 }
0x16bc   :  { %v3683_v62 = vpop.eup %3682 }
0x16bd   :  { %v2684_v28 = vmul.f32 %v3683_v62, %v2668_v14 }
0x16bf   :  { %v2692_v30 = vmul.f32 %v2902_v27, %v2684_v28 }
0x16c0   :  { %v3685_v31 = vpop.eup %3684 }
0x16c1   :  { %v2685_v32 = vmul.f32 %v3685_v31, %v2669_v17  ;;  %v2700_v33 = vadd.f32 %v2903_v29, %v2692_v30 }
0x16c3   :  { %v2693_v34 = vmul.f32 %v2902_v27, %v2685_v32 }
0x16c5   :  { %v2701_v35 = vadd.f32 %v2903_v29, %v2693_v34 }
0x16c7   :  { %v2702_v7 = vmax.f32 %v2700_v33, %v2701_v35 }
0x16c9   :  { %3309 = vmatmul.mubr.msk.f32.vlgmr.msra.gmra.mrb[22].mxu1 %vm199_vm2, %v2702_v7 }
0x179c   :  { %v2783_v36 = vpop.f32.mrb[22].mxu1 }
0x179d   :  { %v2784_v59 = vadd.f32 %v2904_v5, %v2783_v36  ;;  %v3310_v37 = vpop.f32.mrb[23].mxu1 }
0x179f   :  { %2787 = vst [vmem:[%s4317_s17] sm:$0xff] %v2784_v59 }

</bundles_post_ra>
